<compile_context>
chip_gen: v7x
topology: tpu7x:2x2x1
jax: 0.10.0
libtpu: 0.0.40
codegen_flags: <defaults>
</compile_context>

<pallas_src>
import jax
import jax.numpy as jnp
from jax.experimental import pallas as pl
from jax.experimental.pallas import tpu as pltpu

LN_EPS = 1e-5  # PyTorch nn.LayerNorm default


def _round_up(n, m):
    return ((n + m - 1) // m) * m


def _layernorm_relu(h, gamma, beta):
    """LayerNorm (single-pass stats, f32) + affine + ReLU.

    Mathematically identical to PyTorch's LayerNorm (population variance,
    affine applied after normalization) followed by ReLU.
    """
    d = h.shape[-1]
    inv_d = jnp.float32(1.0 / d)
    s = jnp.sum(h, axis=-1, keepdims=True)
    ss = jnp.sum(h * h, axis=-1, keepdims=True)
    mu = s * inv_d
    var = jnp.maximum(ss * inv_d - mu * mu, 0.0)
    h = (h - mu) * jax.lax.rsqrt(var + LN_EPS)
    return jnp.maximum(h * gamma + beta, 0.0)


def featurenet_kernel(x_ref,
                      w1_ref, b1_ref, g1_ref, be1_ref,
                      w2_ref, b2_ref, g2_ref, be2_ref,
                      w3_ref, b3_ref,
                      o_ref):
    mxu = w1_ref.dtype  # bf16 (or f32) MXU-operand dtype

    # fc1 + LayerNorm + ReLU  (bf16 MXU operands, f32 accumulate / LN)
    h1 = jnp.dot(x_ref[...], w1_ref[...],
                 preferred_element_type=jnp.float32) + b1_ref[...]
    h1 = _layernorm_relu(h1, g1_ref[...], be1_ref[...])

    # fc2 + LayerNorm + ReLU
    h2 = jnp.dot(h1.astype(mxu), w2_ref[...],
                 preferred_element_type=jnp.float32) + b2_ref[...]
    h2 = _layernorm_relu(h2, g2_ref[...], be2_ref[...])

    # fc3 (no activation)
    h3 = jnp.dot(h2.astype(mxu), w3_ref[...],
                 preferred_element_type=jnp.float32) + b3_ref[...]
    o_ref[...] = h3.astype(o_ref.dtype)


def featurenet_forward(x, params, *, tile_m=512, mxu_dtype=jnp.bfloat16):
    """FeatureNet forward (isdp=False path) as one fused Pallas kernel.

    x: (B, n_genes) float32.
    params: dict from init_params (weights as (in, out), vectors as (1, d)).
    """
    # TODO(synk): dropout (isdp=True path) not implemented; the default
    # PyTorch forward uses isdp=False, which is the identity.
    B, n_genes = x.shape
    d1 = params["w1"].shape[1]
    d2 = params["w2"].shape[1]
    d3 = params["w3"].shape[1]

    # Large batch tile, clamped to the (padded) batch and kept a multiple of 8
    # (sublane). Padding the batch (instead of shrinking tile_m) keeps MXU
    # occupancy and unmasked stores; padded rows are sliced off at the end.
    tile_m = max(8, min(_round_up(int(tile_m), 8), _round_up(B, 8)))
    Bp = _round_up(B, tile_m)
    if Bp != B:
        x = jnp.pad(x, ((0, Bp - B), (0, 0)))

    mxu_bytes = jnp.dtype(mxu_dtype).itemsize
    x_in = x.astype(mxu_dtype)
    w1 = params["w1"].astype(mxu_dtype)
    w2 = params["w2"].astype(mxu_dtype)
    w3 = params["w3"].astype(mxu_dtype)
    # Biases / LayerNorm affine stay f32 (all non-MXU math is f32).
    b1, g1, be1 = params["b1"], params["g1"], params["be1"]
    b2, g2, be2 = params["b2"], params["g2"], params["be2"]
    b3 = params["b3"]

    # Resident (single-buffered) whole-array VMEM for every operand whose
    # block index never changes across the grid.
    resident = pl.BlockSpec(memory_space=pltpu.MemorySpace.VMEM)

    grid_spec = pltpu.PrefetchScalarGridSpec(
        num_scalar_prefetch=0,
        grid=(Bp // tile_m,),
        in_specs=[
            pl.BlockSpec((tile_m, n_genes), lambda i: (i, 0)),   # x (pipelined)
            resident, resident, resident, resident,              # w1, b1, g1, be1
            resident, resident, resident, resident,              # w2, b2, g2, be2
            resident, resident,                                  # w3, b3
        ],
        out_specs=pl.BlockSpec((tile_m, d3), lambda i: (i, 0)),
    )

    # VMEM budget: resident weights + double-buffered x/out tiles +
    # intermediates, 2x headroom; floor 32 MiB, cap 60 MiB (v7x physical VMEM
    # is 64 MiB).  NOTE: for very large n_genes where w1 alone no longer fits
    # VMEM, fc1 should instead be K-tiled with a (tile_m, d1) f32 accumulator
    # and an extra "arbitrary" grid axis; not needed at these sizes.
    weight_bytes = (n_genes * d1 + d1 * d2 + d2 * d3) * mxu_bytes
    small_bytes = (3 * d1 + 3 * d2 + d3) * 4
    tile_bytes = 2 * tile_m * n_genes * mxu_bytes + 2 * tile_m * d3 * 4
    inter_bytes = 2 * tile_m * (d1 + d2 + d3) * 4
    need = weight_bytes + small_bytes + tile_bytes + inter_bytes
    vmem_limit = int(min(max(2 * need, 32 << 20), 60 << 20))

    cost = pl.CostEstimate(
        flops=2 * Bp * (n_genes * d1 + d1 * d2 + d2 * d3),
        transcendentals=2 * Bp,                      # one rsqrt per row per LN
        bytes_accessed=int(Bp * n_genes * mxu_bytes + weight_bytes
                           + small_bytes + Bp * d3 * 4),
    )

    out = pl.pallas_call(
        featurenet_kernel,
        out_shape=jax.ShapeDtypeStruct((Bp, d3), jnp.float32),
        grid_spec=grid_spec,
        compiler_params=pltpu.CompilerParams(
            dimension_semantics=("parallel",),
            vmem_limit_bytes=vmem_limit),
        cost_estimate=cost,
    )(x_in,
      w1, b1, g1, be1,
      w2, b2, g2, be2,
      w3, b3)

    return out[:B] if Bp != B else out


def init_params(key, n_genes, n_embedding=(512, 256, 128)):
    """Deterministic synthetic parameter init (not a checkpoint load)."""
    d1, d2, d3 = n_embedding
    ks = jax.random.split(key, 10)
    scale = lambda fan_in: 1.0 / jnp.sqrt(fan_in)
    return {
        "w1": jax.random.normal(ks[0], (n_genes, d1), jnp.float32) * scale(n_genes),
        "b1": jax.random.normal(ks[1], (1, d1), jnp.float32) * 0.01,
        "g1": 1.0 + 0.1 * jax.random.normal(ks[2], (1, d1), jnp.float32),
        "be1": 0.1 * jax.random.normal(ks[3], (1, d1), jnp.float32),
        "w2": jax.random.normal(ks[4], (d1, d2), jnp.float32) * scale(d1),
        "b2": jax.random.normal(ks[5], (1, d2), jnp.float32) * 0.01,
        "g2": 1.0 + 0.1 * jax.random.normal(ks[6], (1, d2), jnp.float32),
        "be2": 0.1 * jax.random.normal(ks[7], (1, d2), jnp.float32),
        "w3": jax.random.normal(ks[8], (d2, d3), jnp.float32) * scale(d2),
        "b3": jax.random.normal(ks[9], (1, d3), jnp.float32) * 0.01,
    }


def featurenet_ref(x, p, mxu_dtype=jnp.float32):
    """Pure-JAX reference matching the PyTorch forward (isdp=False).

    mxu_dtype lets the reference mirror the kernel's bf16 MXU-operand cast
    (accumulation and LayerNorm stay f32); with float32 it is the exact
    PyTorch-equivalent computation.
    """
    c = lambda a: a.astype(mxu_dtype)
    h = _layernorm_relu(
        jnp.dot(c(x), c(p["w1"]), preferred_element_type=jnp.float32) + p["b1"],
        p["g1"], p["be1"])
    h = _layernorm_relu(
        jnp.dot(c(h), c(p["w2"]), preferred_element_type=jnp.float32) + p["b2"],
        p["g2"], p["be2"])
    return jnp.dot(c(h), c(p["w3"]), preferred_element_type=jnp.float32) + p["b3"]


if __name__ == "__main__":
    key = jax.random.PRNGKey(0)
    k_x, k_p = jax.random.split(key)

    # Small test shapes: batch 200 (not a multiple of tile_m -> exercises the
    # padding path), n_genes=128, embeddings (512, 256, 128).
    B, n_genes = 200, 128
    n_embedding = (512, 256, 128)

    x = jax.random.normal(k_x, (B, n_genes), jnp.float32)
    params = init_params(k_p, n_genes, n_embedding)

    # tile_m=64 -> padded batch 256, 4 grid steps (keeps the demo small but
    # still multi-step; production default is tile_m=512).
    out = featurenet_forward(x, params, tile_m=64)
    out = jax.block_until_ready(out)
    assert out.shape == (B, n_embedding[-1])

    # Check vs a JAX reference using the same bf16 MXU operands (tight-ish;
    # residual differences come only from accumulation order/rounding).
    ref_bf16 = featurenet_ref(x, params, mxu_dtype=jnp.bfloat16)
    assert jnp.allclose(out, ref_bf16, atol=1e-2, rtol=1e-2), \
        "mismatch vs bf16 JAX reference"

    # Sanity check vs the full-f32 (PyTorch-equivalent) reference (loose,
    # accounts for bf16 operand rounding across three matmuls).
    ref_f32 = featurenet_ref(x, params, mxu_dtype=jnp.float32)
    assert jnp.allclose(out, ref_f32, atol=1e-1, rtol=1e-1), \
        "mismatch vs f32 JAX reference"

    print("KERNEL_OK")
</pallas_src>

<mosaic_0001>
module attributes {stable_mosaic.version = 11 : i64} {
  func.func @featurenet_kernel(%arg0: i32, %arg1: memref<64x128xbf16, #tpu.memory_space<vmem>>, %arg2: memref<128x512xbf16, #tpu.memory_space<vmem>>, %arg3: memref<1x512xf32, #tpu.memory_space<vmem>>, %arg4: memref<1x512xf32, #tpu.memory_space<vmem>>, %arg5: memref<1x512xf32, #tpu.memory_space<vmem>>, %arg6: memref<512x256xbf16, #tpu.memory_space<vmem>>, %arg7: memref<1x256xf32, #tpu.memory_space<vmem>>, %arg8: memref<1x256xf32, #tpu.memory_space<vmem>>, %arg9: memref<1x256xf32, #tpu.memory_space<vmem>>, %arg10: memref<256x128xbf16, #tpu.memory_space<vmem>>, %arg11: memref<1x128xf32, #tpu.memory_space<vmem>>, %arg12: memref<64x128xf32, #tpu.memory_space<vmem>>) attributes {dimension_semantics = [#tpu.dimension_semantics<parallel>], iteration_bounds = array<i64: 4>, scalar_prefetch = 0 : i64, scratch_operands = 0 : i64, tpu.core_type = #tpu.core_type<tc>, window_params = [{transform_indices = @transform_0, window_bounds = array<i64: 64, 128>}, {pipeline_mode = #tpu.pipeline_mode<synchronous>, transform_indices = @transform_1, window_bounds = array<i64: 128, 512>}, {pipeline_mode = #tpu.pipeline_mode<synchronous>, transform_indices = @transform_2, window_bounds = array<i64: 1, 512>}, {pipeline_mode = #tpu.pipeline_mode<synchronous>, transform_indices = @transform_3, window_bounds = array<i64: 1, 512>}, {pipeline_mode = #tpu.pipeline_mode<synchronous>, transform_indices = @transform_4, window_bounds = array<i64: 1, 512>}, {pipeline_mode = #tpu.pipeline_mode<synchronous>, transform_indices = @transform_5, window_bounds = array<i64: 512, 256>}, {pipeline_mode = #tpu.pipeline_mode<synchronous>, transform_indices = @transform_6, window_bounds = array<i64: 1, 256>}, {pipeline_mode = #tpu.pipeline_mode<synchronous>, transform_indices = @transform_7, window_bounds = array<i64: 1, 256>}, {pipeline_mode = #tpu.pipeline_mode<synchronous>, transform_indices = @transform_8, window_bounds = array<i64: 1, 256>}, {pipeline_mode = #tpu.pipeline_mode<synchronous>, transform_indices = @transform_9, window_bounds = array<i64: 256, 128>}, {pipeline_mode = #tpu.pipeline_mode<synchronous>, transform_indices = @transform_10, window_bounds = array<i64: 1, 128>}, {transform_indices = @transform_11, window_bounds = array<i64: 64, 128>}]} {
    %c0 = arith.constant 0 : index
    %c0_0 = arith.constant 0 : index
    %0 = vector.load %arg1[%c0, %c0_0] : memref<64x128xbf16, #tpu.memory_space<vmem>>, vector<64x128xbf16>
    %c0_1 = arith.constant 0 : index
    %c0_2 = arith.constant 0 : index
    %1 = vector.load %arg2[%c0_1, %c0_2] : memref<128x512xbf16, #tpu.memory_space<vmem>>, vector<128x512xbf16>
    %cst = arith.constant dense<0.000000e+00> : vector<64x512xf32>
    %2 = tpu.matmul %0, %1, %cst {dimension_numbers = #tpu.dot_dimension_numbers<[1], [0], [0], [1], [0, 0, 1, 1], [], []>} : vector<64x128xbf16>, vector<128x512xbf16>, vector<64x512xf32> -> vector<64x512xf32>
    %c0_3 = arith.constant 0 : index
    %c0_4 = arith.constant 0 : index
    %3 = vector.load %arg3[%c0_3, %c0_4] : memref<1x512xf32, #tpu.memory_space<vmem>>, vector<1x512xf32>
    %4 = vector.broadcast %3 : vector<1x512xf32> to vector<64x512xf32>
    %5 = arith.addf %2, %4 : vector<64x512xf32>
    %c0_5 = arith.constant 0 : index
    %c0_6 = arith.constant 0 : index
    %6 = vector.load %arg4[%c0_5, %c0_6] : memref<1x512xf32, #tpu.memory_space<vmem>>, vector<1x512xf32>
    %c0_7 = arith.constant 0 : index
    %c0_8 = arith.constant 0 : index
    %7 = vector.load %arg5[%c0_7, %c0_8] : memref<1x512xf32, #tpu.memory_space<vmem>>, vector<1x512xf32>
    %cst_9 = arith.constant dense<0.000000e+00> : vector<64xf32>
    %8 = vector.multi_reduction <add>, %5, %cst_9 [1] : vector<64x512xf32> to vector<64xf32>
    %9 = vector.shape_cast %8 : vector<64xf32> to vector<64x1xf32>
    %10 = arith.mulf %5, %5 : vector<64x512xf32>
    %cst_10 = arith.constant dense<0.000000e+00> : vector<64xf32>
    %11 = vector.multi_reduction <add>, %10, %cst_10 [1] : vector<64x512xf32> to vector<64xf32>
    %12 = vector.shape_cast %11 : vector<64xf32> to vector<64x1xf32>
    %cst_11 = arith.constant 0.001953125 : f32
    %13 = vector.broadcast %cst_11 : f32 to vector<64x1xf32>
    %14 = arith.mulf %9, %13 : vector<64x1xf32>
    %cst_12 = arith.constant 0.001953125 : f32
    %15 = vector.broadcast %cst_12 : f32 to vector<64x1xf32>
    %16 = arith.mulf %12, %15 : vector<64x1xf32>
    %17 = arith.mulf %14, %14 : vector<64x1xf32>
    %18 = arith.subf %16, %17 : vector<64x1xf32>
    %cst_13 = arith.constant 0.000000e+00 : f32
    %19 = vector.broadcast %cst_13 : f32 to vector<64x1xf32>
    %20 = arith.maximumf %18, %19 : vector<64x1xf32>
    %21 = vector.broadcast %14 : vector<64x1xf32> to vector<64x512xf32>
    %22 = arith.subf %5, %21 : vector<64x512xf32>
    %cst_14 = arith.constant 9.99999974E-6 : f32
    %23 = vector.broadcast %cst_14 : f32 to vector<64x1xf32>
    %24 = arith.addf %20, %23 : vector<64x1xf32>
    %25 = math.rsqrt %24 : vector<64x1xf32>
    %26 = vector.broadcast %25 : vector<64x1xf32> to vector<64x512xf32>
    %27 = arith.mulf %22, %26 : vector<64x512xf32>
    %28 = vector.broadcast %6 : vector<1x512xf32> to vector<64x512xf32>
    %29 = arith.mulf %27, %28 : vector<64x512xf32>
    %30 = vector.broadcast %7 : vector<1x512xf32> to vector<64x512xf32>
    %31 = arith.addf %29, %30 : vector<64x512xf32>
    %cst_15 = arith.constant 0.000000e+00 : f32
    %32 = vector.broadcast %cst_15 : f32 to vector<64x512xf32>
    %33 = arith.maximumf %31, %32 : vector<64x512xf32>
    %34 = arith.truncf %33 : vector<64x512xf32> to vector<64x512xbf16>
    %c0_16 = arith.constant 0 : index
    %c0_17 = arith.constant 0 : index
    %35 = vector.load %arg6[%c0_16, %c0_17] : memref<512x256xbf16, #tpu.memory_space<vmem>>, vector<512x256xbf16>
    %cst_18 = arith.constant dense<0.000000e+00> : vector<64x256xf32>
    %36 = tpu.matmul %34, %35, %cst_18 {dimension_numbers = #tpu.dot_dimension_numbers<[1], [0], [0], [1], [0, 0, 1, 1], [], []>} : vector<64x512xbf16>, vector<512x256xbf16>, vector<64x256xf32> -> vector<64x256xf32>
    %c0_19 = arith.constant 0 : index
    %c0_20 = arith.constant 0 : index
    %37 = vector.load %arg7[%c0_19, %c0_20] : memref<1x256xf32, #tpu.memory_space<vmem>>, vector<1x256xf32>
    %38 = vector.broadcast %37 : vector<1x256xf32> to vector<64x256xf32>
    %39 = arith.addf %36, %38 : vector<64x256xf32>
    %c0_21 = arith.constant 0 : index
    %c0_22 = arith.constant 0 : index
    %40 = vector.load %arg8[%c0_21, %c0_22] : memref<1x256xf32, #tpu.memory_space<vmem>>, vector<1x256xf32>
    %c0_23 = arith.constant 0 : index
    %c0_24 = arith.constant 0 : index
    %41 = vector.load %arg9[%c0_23, %c0_24] : memref<1x256xf32, #tpu.memory_space<vmem>>, vector<1x256xf32>
    %cst_25 = arith.constant dense<0.000000e+00> : vector<64xf32>
    %42 = vector.multi_reduction <add>, %39, %cst_25 [1] : vector<64x256xf32> to vector<64xf32>
    %43 = vector.shape_cast %42 : vector<64xf32> to vector<64x1xf32>
    %44 = arith.mulf %39, %39 : vector<64x256xf32>
    %cst_26 = arith.constant dense<0.000000e+00> : vector<64xf32>
    %45 = vector.multi_reduction <add>, %44, %cst_26 [1] : vector<64x256xf32> to vector<64xf32>
    %46 = vector.shape_cast %45 : vector<64xf32> to vector<64x1xf32>
    %cst_27 = arith.constant 3.906250e-03 : f32
    %47 = vector.broadcast %cst_27 : f32 to vector<64x1xf32>
    %48 = arith.mulf %43, %47 : vector<64x1xf32>
    %cst_28 = arith.constant 3.906250e-03 : f32
    %49 = vector.broadcast %cst_28 : f32 to vector<64x1xf32>
    %50 = arith.mulf %46, %49 : vector<64x1xf32>
    %51 = arith.mulf %48, %48 : vector<64x1xf32>
    %52 = arith.subf %50, %51 : vector<64x1xf32>
    %cst_29 = arith.constant 0.000000e+00 : f32
    %53 = vector.broadcast %cst_29 : f32 to vector<64x1xf32>
    %54 = arith.maximumf %52, %53 : vector<64x1xf32>
    %55 = vector.broadcast %48 : vector<64x1xf32> to vector<64x256xf32>
    %56 = arith.subf %39, %55 : vector<64x256xf32>
    %cst_30 = arith.constant 9.99999974E-6 : f32
    %57 = vector.broadcast %cst_30 : f32 to vector<64x1xf32>
    %58 = arith.addf %54, %57 : vector<64x1xf32>
    %59 = math.rsqrt %58 : vector<64x1xf32>
    %60 = vector.broadcast %59 : vector<64x1xf32> to vector<64x256xf32>
    %61 = arith.mulf %56, %60 : vector<64x256xf32>
    %62 = vector.broadcast %40 : vector<1x256xf32> to vector<64x256xf32>
    %63 = arith.mulf %61, %62 : vector<64x256xf32>
    %64 = vector.broadcast %41 : vector<1x256xf32> to vector<64x256xf32>
    %65 = arith.addf %63, %64 : vector<64x256xf32>
    %cst_31 = arith.constant 0.000000e+00 : f32
    %66 = vector.broadcast %cst_31 : f32 to vector<64x256xf32>
    %67 = arith.maximumf %65, %66 : vector<64x256xf32>
    %68 = arith.truncf %67 : vector<64x256xf32> to vector<64x256xbf16>
    %c0_32 = arith.constant 0 : index
    %c0_33 = arith.constant 0 : index
    %69 = vector.load %arg10[%c0_32, %c0_33] : memref<256x128xbf16, #tpu.memory_space<vmem>>, vector<256x128xbf16>
    %cst_34 = arith.constant dense<0.000000e+00> : vector<64x128xf32>
    %70 = tpu.matmul %68, %69, %cst_34 {dimension_numbers = #tpu.dot_dimension_numbers<[1], [0], [0], [1], [0, 0, 1, 1], [], []>} : vector<64x256xbf16>, vector<256x128xbf16>, vector<64x128xf32> -> vector<64x128xf32>
    %c0_35 = arith.constant 0 : index
    %c0_36 = arith.constant 0 : index
    %71 = vector.load %arg11[%c0_35, %c0_36] : memref<1x128xf32, #tpu.memory_space<vmem>>, vector<1x128xf32>
    %72 = vector.broadcast %71 : vector<1x128xf32> to vector<64x128xf32>
    %73 = arith.addf %70, %72 : vector<64x128xf32>
    %c0_37 = arith.constant 0 : index
    %c0_38 = arith.constant 0 : index
    %74 = vector.load %arg12[%c0_37, %c0_38] : memref<64x128xf32, #tpu.memory_space<vmem>>, vector<64x128xf32>
    tpu.vector_store %arg12[%c0_37, %c0_38], %73 {strides = array<i32>} : memref<64x128xf32, #tpu.memory_space<vmem>>, vector<64x128xf32>,
    return
  }
  func.func @transform_0(%arg0: i32) -> (i32, i32) {
    %c0_i32 = arith.constant 0 : i32
    %c0_i32_0 = arith.constant 0 : i32
    return %arg0, %c0_i32 : i32, i32
  }
  func.func @transform_1(%arg0: i32) -> (i32, i32) {
    %c0_i32 = arith.constant 0 : i32
    %c0_i32_0 = arith.constant 0 : i32
    %c0_i32_1 = arith.constant 0 : i32
    return %c0_i32, %c0_i32_0 : i32, i32
  }
  func.func @transform_2(%arg0: i32) -> (i32, i32) {
    %c0_i32 = arith.constant 0 : i32
    %c0_i32_0 = arith.constant 0 : i32
    %c0_i32_1 = arith.constant 0 : i32
    return %c0_i32, %c0_i32_0 : i32, i32
  }
  func.func @transform_3(%arg0: i32) -> (i32, i32) {
    %c0_i32 = arith.constant 0 : i32
    %c0_i32_0 = arith.constant 0 : i32
    %c0_i32_1 = arith.constant 0 : i32
    return %c0_i32, %c0_i32_0 : i32, i32
  }
  func.func @transform_4(%arg0: i32) -> (i32, i32) {
    %c0_i32 = arith.constant 0 : i32
    %c0_i32_0 = arith.constant 0 : i32
    %c0_i32_1 = arith.constant 0 : i32
    return %c0_i32, %c0_i32_0 : i32, i32
  }
  func.func @transform_5(%arg0: i32) -> (i32, i32) {
    %c0_i32 = arith.constant 0 : i32
    %c0_i32_0 = arith.constant 0 : i32
    %c0_i32_1 = arith.constant 0 : i32
    return %c0_i32, %c0_i32_0 : i32, i32
  }
  func.func @transform_6(%arg0: i32) -> (i32, i32) {
    %c0_i32 = arith.constant 0 : i32
    %c0_i32_0 = arith.constant 0 : i32
    %c0_i32_1 = arith.constant 0 : i32
    return %c0_i32, %c0_i32_0 : i32, i32
  }
  func.func @transform_7(%arg0: i32) -> (i32, i32) {
    %c0_i32 = arith.constant 0 : i32
    %c0_i32_0 = arith.constant 0 : i32
    %c0_i32_1 = arith.constant 0 : i32
    return %c0_i32, %c0_i32_0 : i32, i32
  }
  func.func @transform_8(%arg0: i32) -> (i32, i32) {
    %c0_i32 = arith.constant 0 : i32
    %c0_i32_0 = arith.constant 0 : i32
    %c0_i32_1 = arith.constant 0 : i32
    return %c0_i32, %c0_i32_0 : i32, i32
  }
  func.func @transform_9(%arg0: i32) -> (i32, i32) {
    %c0_i32 = arith.constant 0 : i32
    %c0_i32_0 = arith.constant 0 : i32
    %c0_i32_1 = arith.constant 0 : i32
    return %c0_i32, %c0_i32_0 : i32, i32
  }
  func.func @transform_10(%arg0: i32) -> (i32, i32) {
    %c0_i32 = arith.constant 0 : i32
    %c0_i32_0 = arith.constant 0 : i32
    %c0_i32_1 = arith.constant 0 : i32
    return %c0_i32, %c0_i32_0 : i32, i32
  }
  func.func @transform_11(%arg0: i32) -> (i32, i32) {
    %c0_i32 = arith.constant 0 : i32
    %c0_i32_0 = arith.constant 0 : i32
    return %arg0, %c0_i32 : i32, i32
  }
}

</mosaic_0001>

<bundles_post_ra>
// kernel: tpu_custom_call.1
= control target key start
LH: loop header
LB: loop body
LE: loop exit
PB: predicated region body
PF: predicated region fallthrough
CT: control target
= control target key end

     0   :  { %s4126_s0 = inlined_call_operand.hbm [shape: bf16[256,128], index: 0, kind: input, shape index: {}]   ;;  %s4127_s1 = inlined_call_operand.hbm [shape: bf16[128,512], index: 1, kind: input, shape index: {}]   ;;  %s4128_s2 = inlined_call_operand.vmem [shape: f32[1,512], index: 2, kind: input, shape index: {}]   ;;  %s4129_s3 = inlined_call_operand.vmem [shape: f32[1,512], index: 3, kind: input, shape index: {}]   ;;  %s4130_s4 = inlined_call_operand.vmem [shape: f32[1,512], index: 4, kind: input, shape index: {}]   ;;  %s4131_s5 = inlined_call_operand.hbm [shape: bf16[512,256], index: 5, kind: input, shape index: {}]   ;;  %s4132_s6 = inlined_call_operand.vmem [shape: f32[1,256], index: 6, kind: input, shape index: {}]   ;;  %s4133_s7 = inlined_call_operand.vmem [shape: f32[1,256], index: 7, kind: input, shape index: {}]   ;;  %s4134_s8 = inlined_call_operand.vmem [shape: f32[1,256], index: 8, kind: input, shape index: {}]   ;;  %s4135_s9 = inlined_call_operand.hbm [shape: bf16[256,128], index: 9, kind: input, shape index: {}]   ;;  %s4136_s10 = inlined_call_operand.vmem [shape: f32[1,128], index: 10, kind: input, shape index: {}]   ;;  %s4137_s11 = inlined_call_operand.hbm [shape: f32[256,128], index: 11, kind: output, shape index: {}]  }
   0x1   :  { %4148 = sst [smem:[#allocation19_spill]] %s4127_s1 }
   0x2   :  { %4149 = sst [smem:[#allocation20_spill]] %s4136_s10 }
   0x3   :  { %4150 = sst [smem:[#allocation21_spill]] %s4137_s11 }
   0x4   :  { %16 = vsyncpa [#allocation3], 0 }
   0x5   :  { %18 = vsyncpa [#allocation3 + $0x1], 0 }
   0x6   :  { %19 = vsyncpa [#allocation6], 0 }
   0x7   :  { %20 = vsyncpa [#allocation9], 0 }
   0x8   :  { %21 = vsyncpa [#allocation4], 0 }
   0x9   :  { %23 = vsyncpa [#allocation4 + $0x1], 0  ;;  %s3087_s17 = smov 0   ;;  %s3089_s18 = smov 0  }
   0xa   :  { %s3091_s19 = smov 0   ;;  %s3093_s20 = smov 0  }
   0xb LB: > { %4151 = sst [smem:[#allocation15_spill]] %s2999_s17  ;;  %s3108_s21 = sadd.s32 4294967295, %s3011_s20   ;;  %s3011_s20 = sphi %s3093_s20, %s4201_s20   ;;  %s3007_s19 = sphi %s3091_s19, %s4200_s19   ;;  %s3003_s18 = sphi %s3089_s18, %s4199_s18   ;;  %s2999_s17 = sphi %s3087_s17, %s4198_s17  }
   0xc   : > { %s2330_s22 = sadd.s32 4294967294, %s3011_s20   ;;  %p49_p0 = scmp.ne.s32.totalorder %s3003_s18, %s2999_s17 }
   0xd   : > { %p4138_p1 = scmp.eq.s32.totalorder %s3108_s21, 0  ;;  %p289_p3 = scmp.eq.s32.totalorder %s2330_s22, 3 }
   0xe   : > { %p2331_p5 = scmp.ge.s32.totalorder %s3011_s20, 1  ;;  %p296_p7 = scmp.lt.s32.totalorder %s3011_s20, 5 }
   0xf   : > { %p3117_p4 = por %p4138_p1, %p49_p0  ;;  %p3122_p6 = por %p289_p3, %p49_p0 }
  0x10   : > { %p3127_p8 = pnand %p2331_p5, %p296_p7  ;;  %s3013_s26 = smov [#allocation5]  }
  0x11   : > { %s4152_s23 = scalar_select %p3117_p4, 1, 0 }
  0x12   : > { %s4153_s24 = scalar_select %p3122_p6, 1, 0 }
  0x13   : > { %s4155_s25 = scalar_select %p3127_p8, 1, 0 }
  0x14   : > { %4154 = sst [smem:[#allocation16_spill]] %s4153_s24  ;;  %s308_s27 = sshll.u32 %s3013_s26, 4  ;;  %s309_s27 = int_to_ptr.vmem [resolvable:$true] %s308_s27 }
  0x15   : > { %p2557_p9 = pneg %p3127_p8  ;;  %s3014_s29 = smov [#allocation7]  }
  0x16   : > { %s330_s30 = sshll.u32 %s3014_s29, 4  ;;  %s4157_s1 = sld [smem:[#allocation19_spill]]  ;;  %s3139_s30 = int_to_ptr.vmem [resolvable:$true] %s330_s30 }
  0x17   : > { %p3135_p10 = pnand %p2557_p9, %p4138_p1 }
  0x19   : > { %p3149_p12 = pneg %p3135_p10 }
  0x1c   : > { %s2823_s14 = scalar_lea.hbm %s4157_s1, 4096 }
  0x1d   : > { %p2824_p11 = scmp.ne.s32.totalorder %s4157_s1, %s2823_s14  ;;  %p2830_p3 = scmp.lt.u32.totalorder %s2823_s14, %s4157_s1 }
  0x1f   : > { %p2826_p13 = pnand %p3149_p12, %p2824_p11 }
  0x21   : > { %p2827_p0 = pneg %p2826_p13 }
  0x23   : > { %p2832_p5 = pnand %p2830_p3, %p2827_p0 }
  0x25   : > { %2835 = shalt.err (!%p2832_p5)
}
  0x26   : > { %s2836_s12 = scalar_lea.vmem %s309_s27, 4096  ;;  %p2844_p2 = scmp.lt.s32.totalorder %s309_s27, %s309_s27 }
  0x27   : > { %p2837_p7 = scmp.ne.s32.totalorder %s309_s27, %s2836_s12  ;;  %p2845_p6 = scmp.lt.s32.totalorder %s2836_s12, %s2836_s12 }
  0x29   : > { %p2839_p9 = pnand %p2837_p7, %p3149_p12  ;;  %p2846_p4 = por %p2845_p6, %p2844_p2 }
  0x2b   : > { %p2840_p1 = pneg %p2839_p9 }
  0x2d   : > { %p2847_p8 = pnand %p2846_p4, %p2840_p1 }
  0x2f   : > { %2850 = shalt.err (!%p2847_p8)
}
  0x30   : > { %s3015_s13 = smov 256   ;;  %s3016_s15 = smov 16  }
  0x31   : > { %2560 = dma.hbm_to_vmem [thread:$0]  (!%p3135_p10), %s4157_s1, 4096, %s309_s27, [#allocation6], %s3015_s13, %s3015_s13, %s3016_s15  }
  0x32   : > { %s2851_s24 = scalar_lea.hbm %s4131_s5, 8192 }
  0x33   : > { %p2852_p11 = scmp.ne.s32.totalorder %s4131_s5, %s2851_s24  ;;  %p2858_p4 = scmp.lt.u32.totalorder %s2851_s24, %s4131_s5 }
  0x35   : > { %p2854_p1 = pnand %p2852_p11, %p3149_p12 }
  0x37   : > { %p2855_p2 = pneg %p2854_p1 }
  0x39   : > { %p2860_p6 = pnand %p2858_p4, %p2855_p2 }
  0x3b   : > { %2863 = shalt.err (!%p2860_p6)
}
  0x3c   : > { %s2864_s27 = scalar_lea.vmem %s3139_s30, 8192  ;;  %p2872_p3 = scmp.lt.s32.totalorder %s3139_s30, %s3139_s30 }
  0x3d   : > { %p2865_p8 = scmp.ne.s32.totalorder %s3139_s30, %s2864_s27  ;;  %p2873_p5 = scmp.lt.s32.totalorder %s2864_s27, %s2864_s27 }
  0x3f   : > { %p2867_p13 = pnand %p2865_p8, %p3149_p12  ;;  %p2874_p7 = por %p2873_p5, %p2872_p3 }
  0x41   : > { %p2868_p0 = pneg %p2867_p13 }
  0x43   : > { %p2875_p9 = pnand %p2874_p7, %p2868_p0 }
  0x45   : > { %2878 = shalt.err (!%p2875_p9)
}
  0x46   : > { %s3017_s11 = smov 128   ;;  %s3018_s10 = smov 8  }
  0x47   : > { %2563 = dma.hbm_to_vmem [thread:$0]  (!%p3135_p10), %s4131_s5, 8192, %s3139_s30, [#allocation6], %s3017_s11, %s3017_s11, %s3018_s10  }
  0x48   : > { %s3019_s13 = smov [#allocation8]   ;;  %s2879_s26 = scalar_lea.hbm %s4135_s9, 2048 }
  0x49   : > { %s352_s15 = sshll.u32 %s3019_s13, 4  ;;  %p2880_p11 = scmp.ne.s32.totalorder %s4135_s9, %s2879_s26  ;;  %s353_s15 = int_to_ptr.vmem [resolvable:$true] %s352_s15 }
  0x4a   : > { %p2886_p4 = scmp.lt.u32.totalorder %s2879_s26, %s4135_s9 }
  0x4b   : > { %p2882_p1 = pnand %p2880_p11, %p3149_p12 }
  0x4d   : > { %p2883_p2 = pneg %p2882_p1 }
  0x4f   : > { %p2888_p6 = pnand %p2886_p4, %p2883_p2 }
  0x51   : > { %2891 = shalt.err (!%p2888_p6)
}
  0x52   : > { %s2892_s30 = scalar_lea.vmem %s353_s15, 2048  ;;  %p2900_p3 = scmp.lt.s32.totalorder %s353_s15, %s353_s15 }
  0x53   : > { %p2893_p8 = scmp.ne.s32.totalorder %s353_s15, %s2892_s30  ;;  %p2901_p5 = scmp.lt.s32.totalorder %s2892_s30, %s2892_s30 }
  0x55   : > { %p2895_p13 = pnand %p2893_p8, %p3149_p12  ;;  %p2902_p7 = por %p2901_p5, %p2900_p3 }
  0x57   : > { %p2896_p0 = pneg %p2895_p13 }
  0x59   : > { %p2903_p9 = pnand %p2902_p7, %p2896_p0 }
  0x5b   : > { %2906 = shalt.err (!%p2903_p9)
}
  0x5c   : > { %s3020_s11 = smov 64   ;;  %s3021_s1 = smov 4  }
  0x5d   : > { %2566 = dma.hbm_to_vmem [thread:$0]  (!%p3135_p10), %s4135_s9, 2048, %s353_s15, [#allocation9], %s3020_s11, %s3020_s11, %s3021_s1  }
  0x5e   : > { %s3210_s17 = sadd.s32 1, %s3011_s20   ;;  %s36_s13 = sadd.s32 1, %s3007_s19 }
  0x5f   : > { %s33_s24 = ssub.s32 %s3011_s20, %s3210_s17  ;;  %p43_p11 = scmp.ne.s32.totalorder %s3007_s19, %s3003_s18 }
  0x60   : > { %p34_p12 = scmp.eq.s32.totalorder %s33_s24, 0  ;;  %p44_p1 = scmp.eq.s32.totalorder %s3011_s20, 0 }
  0x61   : > { %p2578_p2 = scmp.lt.s32.totalorder %s3011_s20, 4  ;;  %p4159_p6 = scmp.eq.s32.totalorder %s3108_s21, 3 }
  0x62   : > { %s3220_s16 = scalar_select %p34_p12, %s3007_s19, %s36_s13  }
  0x63   : > { %p45_p4 = por %p44_p1, %p43_p11  ;;  %p3224_p8 = por %p4159_p6, %p43_p11 }
  0x64   : > { %s369_s14 = sand.u32 1, %s3007_s19   ;;  %s2467_s26 = sshll.u32 %s3011_s20, 9 }
  0x65   : > { %s2336_s15 = sshll.u32 %s369_s14, 5  ;;  %s3233_s27 = scalar_lea.hbm %s4126_s0, %s2467_s26 }
  0x66   : > { %s373_s30 = scalar_lea.vmem [#allocation2], %s2336_s15  ;;  %p3235_p10 = pnand %p2578_p2, %p45_p4 }
  0x67   : > { %s380_s22 = sshll.u32 %s373_s30, 4  ;;  %s3241_s24 = scalar_lea.sflag [#allocation3], %s369_s14  ;;  %s3239_s22 = int_to_ptr.vmem [resolvable:$true] %s380_s22 }
  0x68   : > { %s2907_s13 = scalar_lea.hbm %s3233_s27, 512  ;;  %p2909_p0 = pneg %p3235_p10 }
  0x69   : > { %p2908_p13 = scmp.ne.s32.totalorder %s3233_s27, %s2907_s13  ;;  %s2912_s29 = scalar_lea.hbm %s4126_s0, 2048 }
  0x6a   : > { %p2913_p7 = scmp.lt.u32.totalorder %s3233_s27, %s4126_s0  ;;  %p2914_p9 = scmp.lt.u32.totalorder %s2912_s29, %s2907_s13 }
  0x6b   : > { %p2910_p3 = pnand %p2909_p0, %p2908_p13  ;;  %p2916_p11 = scmp.lt.u32.totalorder %s2907_s13, %s3233_s27 }
  0x6c   : > { %p2915_p12 = por %p2914_p9, %p2913_p7 }
  0x6d   : > { %p2911_p5 = pneg %p2910_p3 }
  0x6e   : > { %p2917_p1 = por %p2916_p11, %p2915_p12 }
  0x70   : > { %p2918_p2 = pnand %p2917_p1, %p2911_p5 }
  0x72   : > { %2921 = shalt.err (!%p2918_p2)
}
  0x73   : > { %s2922_s14 = scalar_lea.vmem %s3239_s22, 512  ;;  %s3022_s26 = smov [#allocation2]  }
  0x74   : > { %p2923_p4 = scmp.ne.s32.totalorder %s3239_s22, %s2922_s14  ;;  %s2927_s15 = sshll.u32 %s3022_s26, 4  ;;  %s2928_s15 = int_to_ptr.vmem [resolvable:$false] %s2927_s15 }
  0x75   : > { %s2929_s12 = scalar_lea.vmem %s2928_s15, 1024  ;;  %p2930_p3 = scmp.lt.s32.totalorder %s3239_s22, %s2928_s15 }
  0x76   : > { %p2925_p6 = pnand %p2923_p4, %p2909_p0  ;;  %p2931_p7 = scmp.lt.s32.totalorder %s2929_s12, %s2922_s14 }
  0x78   : > { %p2926_p13 = pneg %p2925_p6  ;;  %p2932_p9 = por %p2931_p7, %p2930_p3 }
  0x7a   : > { %p2933_p12 = pnand %p2932_p9, %p2926_p13 }
  0x7c   : > { %2936 = shalt.err (!%p2933_p12)
}
  0x7d   : > { %2570 = dma.hbm_to_vmem [thread:$0]  (!%p3235_p10), %s3233_s27, 512, %s3239_s22, %s3241_s24, %s3020_s11, %s3020_s11, %s3021_s1  }
  0x7e   : > { %p4162_p0 = scmp.ne.s32.totalorder %s4155_s25, 0 }
  0x80   : > { %392 = sbr.rel (%p4162_p0) target bundleno = 1325 (0x52d), region = 64 }
  0x87   : > { %s3275_s13 = sand.u32 1, %s3003_s18   ;;  %p4163_p5 = scmp.ne.s32.totalorder %s4152_s23, 0 }
  0x88   : > { %s2340_s29 = sshll.u32 %s3275_s13, 5  ;;  %s395_s30 = scalar_lea.sflag [#allocation3], %s3275_s13 }
  0x89   : > { %s3279_s14 = scalar_lea.vmem [#allocation2], %s2340_s29 }
  0x8a   : > { %2982 = dma.done.wait (%p4163_p5), %s395_s30, 512  }
  0x8b   : > { %2984 = vsyncadd (%p4163_p5), %s395_s30, 4294966784  ;;  %p4164_p10 = scmp.eq.s32.totalorder %s3108_s21, 0 }
  0x8d   : > { %2986 = dma.done.wait (%p4164_p10), [#allocation6], 12288   ;;  %p4165_p11 = pmov %p4164_p10 }
  0x8e   : > { %p4166_p1 = pmov %p4164_p10 }
  0x8f   : > { %2988 = vsyncadd (%p4165_p11), [#allocation6], 4294955008 }
  0x90   : > { %2990 = dma.done.wait (%p4166_p1), [#allocation9], 2048   ;;  %p4167_p2 = pmov %p4166_p1 }
  0x91   : > { %v3023_v0 = vmov 0   ;;  %v2627_v1 = vld [vmem:[#allocation5 + $0x4] ss:$16 sps:$4 sm:$0xff]   ;;  %v2629_v2 = vld [vmem:[#allocation5] ss:$16 sps:$4 sm:$0xff]   ;;  %v2658_v23 = vld [vmem:[%s3279_s14 + $0x8] sm:$0xff]   ;;  %v494_v58 = vlaneseq }
  0x92   : > { %2992 = vsyncadd (%p4167_p2), [#allocation9], 4294965248  ;;  %730 = vmatprep.mubr.bf16.mxu1 %v3023_v0  ;;  %698 = vmatprep.subr.bf16.mxu1 %v2627_v1  ;;  %v2630_v3 = vld [vmem:[#allocation5 + $0x24] ss:$16 sps:$4 sm:$0xff]   ;;  %v2632_v4 = vld [vmem:[#allocation5 + $0x20] ss:$16 sps:$4 sm:$0xff]  }
  0x93   : > { %699 = vmatpush1.bf16.msra.mxu1 %v2629_v2  ;;  %v2633_v5 = vld [vmem:[#allocation5 + $0x44] ss:$16 sps:$4 sm:$0xff]   ;;  %v2635_v6 = vld [vmem:[#allocation5 + $0x40] ss:$16 sps:$4 sm:$0xff]   ;;  %v2654_v17 = vld [vmem:[#allocation5 + $0xc] ss:$16 sps:$4 sm:$0xff]  }
  0x94   : > { %700 = vmatprep.subr.bf16.mxu1 %v2630_v3  ;;  %v2636_v7 = vld [vmem:[#allocation5 + $0x64] ss:$16 sps:$4 sm:$0xff]   ;;  %v2638_v8 = vld [vmem:[#allocation5 + $0x60] ss:$16 sps:$4 sm:$0xff]   ;;  %v2652_v19 = vld [vmem:[#allocation5 + $0x8] ss:$16 sps:$4 sm:$0xff]  }
  0x95   : > { %v2639_v9 = vld [vmem:[#allocation5 + $0x84] ss:$16 sps:$4 sm:$0xff]   ;;  %v2641_v10 = vld [vmem:[#allocation5 + $0x80] ss:$16 sps:$4 sm:$0xff]   ;;  %v2657_v20 = vld [vmem:[#allocation5 + $0x2c] ss:$16 sps:$4 sm:$0xff]  }
  0x96   : > { %v2642_v11 = vld [vmem:[#allocation5 + $0xa4] ss:$16 sps:$4 sm:$0xff]   ;;  %v2644_v12 = vld [vmem:[#allocation5 + $0xa0] ss:$16 sps:$4 sm:$0xff]   ;;  %v2655_v21 = vld [vmem:[#allocation5 + $0x28] ss:$16 sps:$4 sm:$0xff]  }
  0x97   : > { %701 = vmatpush1.bf16.msra.mxu1 %v2632_v4  ;;  %v2645_v13 = vld [vmem:[#allocation5 + $0xc4] ss:$16 sps:$4 sm:$0xff]   ;;  %v2647_v14 = vld [vmem:[#allocation5 + $0xc0] ss:$16 sps:$4 sm:$0xff]   ;;  %v2661_v22 = vld [vmem:[#allocation5 + $0x4c] ss:$16 sps:$4 sm:$0xff]  }
  0x98   : > { %702 = vmatprep.subr.bf16.mxu1 %v2633_v5  ;;  %v2648_v15 = vld [vmem:[#allocation5 + $0xe4] ss:$16 sps:$4 sm:$0xff]   ;;  %v2650_v16 = vld [vmem:[#allocation5 + $0xe0] ss:$16 sps:$4 sm:$0xff]   ;;  %v2659_v24 = vld [vmem:[#allocation5 + $0x48] ss:$16 sps:$4 sm:$0xff]  }
  0x99   : > { %v2651_v18 = vld [vmem:[%s3279_s14] sm:$0xff]   ;;  %v2664_v25 = vld [vmem:[#allocation5 + $0x6c] ss:$16 sps:$4 sm:$0xff]   ;;  %v2662_v26 = vld [vmem:[#allocation5 + $0x68] ss:$16 sps:$4 sm:$0xff]   ;;  %v495_v61 = vshrl.u32 %v494_v58, 7 }
  0x9a   : > { %v2668_v27 = vld [vmem:[#allocation5 + $0x8c] ss:$16 sps:$4 sm:$0xff]   ;;  %v2665_v28 = vld [vmem:[%s3279_s14 + $0x10] sm:$0xff]   ;;  %v2666_v29 = vld [vmem:[#allocation5 + $0x88] ss:$16 sps:$4 sm:$0xff]   ;;  %s2344_s30 = sshll.u32 %s3275_s13, 6 }
  0x9b   : > { %703 = vmatpush1.bf16.msra.mxu1 %v2635_v6  ;;  %v2671_v30 = vld [vmem:[#allocation5 + $0xac] ss:$16 sps:$4 sm:$0xff]   ;;  %v2669_v31 = vld [vmem:[#allocation5 + $0xa8] ss:$16 sps:$4 sm:$0xff]   ;;  %v3307_v1 = vsub.s32 1, %v495_v61  ;;  %s4192_s25 = sld [smem:[#allocation20_spill]] }
  0x9c   : > { %704 = vmatprep.subr.bf16.mxu1 %v2636_v7  ;;  %v2675_v32 = vld [vmem:[#allocation5 + $0xcc] ss:$16 sps:$4 sm:$0xff]   ;;  %v2673_v34 = vld [vmem:[#allocation5 + $0xc8] ss:$16 sps:$4 sm:$0xff]   ;;  %v492_v3 = vld [vmem:[%s4128_s2] sm:$0xf] }
  0x9d   : > { %v2672_v33 = vld [vmem:[%s3279_s14 + $0x18] sm:$0xff]   ;;  %v2679_v37 = vld [vmem:[#allocation7 + $0x4] ss:$8 sps:$4 sm:$0xff]   ;;  %v2681_v38 = vld [vmem:[#allocation7] ss:$8 sps:$4 sm:$0xff]   ;;  %4169 = vst [vmem:[#allocation18_spill] sm:$0xff] %v3307_v1  ;;  %v3316_v6 = vrot.slane %v492_v3, %v3307_v1 }
  0x9e   : > { %v2678_v35 = vld [vmem:[#allocation5 + $0xec] ss:$16 sps:$4 sm:$0xff]   ;;  %v2676_v36 = vld [vmem:[#allocation5 + $0xe8] ss:$16 sps:$4 sm:$0xff]   ;;  %1628 = vmatprep.subr.bf16.mxu0 %v2679_v37  ;;  %s4066_s11 = scalar_lea.vmem [#allocation10], %s2344_s30  ;;  %s2468_s27 = sshll.u32 %s3108_s21, 10 }
  0x9f   : > { %705 = vmatpush1.bf16.msra.mxu1 %v2638_v8  ;;  %v2682_v39 = vld [vmem:[#allocation7 + $0x14] ss:$8 sps:$4 sm:$0xff]   ;;  %1629 = vmatpush1.bf16.msra.mxu0 %v2681_v38  ;;  %v2684_v40 = vld [vmem:[#allocation7 + $0x10] ss:$8 sps:$4 sm:$0xff]   ;;  %v2685_v41 = vld [vmem:[#allocation7 + $0x24] ss:$8 sps:$4 sm:$0xff]  }
  0xa0   : > { %706 = vmatprep.subr.bf16.mxu1 %v2639_v9  ;;  %1630 = vmatprep.subr.bf16.mxu0 %v2682_v39  ;;  %v2687_v42 = vld [vmem:[#allocation7 + $0x20] ss:$8 sps:$4 sm:$0xff]   ;;  %v2688_v43 = vld [vmem:[#allocation7 + $0x34] ss:$8 sps:$4 sm:$0xff]   ;;  %v2690_v44 = vld [vmem:[#allocation7 + $0x30] ss:$8 sps:$4 sm:$0xff]  }
  0xa1   : > { %v2691_v45 = vld [vmem:[#allocation7 + $0x44] ss:$8 sps:$4 sm:$0xff]   ;;  %v2693_v46 = vld [vmem:[#allocation7 + $0x40] ss:$8 sps:$4 sm:$0xff]   ;;  %v2694_v47 = vld [vmem:[#allocation7 + $0x54] ss:$8 sps:$4 sm:$0xff]  }
  0xa2   : > { %v2696_v48 = vld [vmem:[#allocation7 + $0x50] ss:$8 sps:$4 sm:$0xff]   ;;  %v2697_v49 = vld [vmem:[#allocation7 + $0x64] ss:$8 sps:$4 sm:$0xff]   ;;  %v2699_v50 = vld [vmem:[#allocation7 + $0x60] ss:$8 sps:$4 sm:$0xff]  }
  0xa3   : > { %707 = vmatpush1.bf16.msra.mxu1 %v2641_v10  ;;  %1631 = vmatpush1.bf16.msra.mxu0 %v2684_v40  ;;  %v2700_v51 = vld [vmem:[#allocation7 + $0x74] ss:$8 sps:$4 sm:$0xff]   ;;  %v3322_v9 = vsub.s32 2, %v495_v61  ;;  %s2228_s1 = sshll.u32 %s4066_s11, 4  ;;  %s4193_s24 = sld [smem:[#allocation21_spill]]  ;;  %s4076_s1 = int_to_ptr.vmem [resolvable:$true] %s2228_s1 }
  0xa4   : > { %708 = vmatprep.subr.bf16.mxu1 %v2642_v11  ;;  %1632 = vmatprep.subr.bf16.mxu0 %v2685_v41  ;;  %s2215_s15 = scalar_lea.sflag [#allocation4], %s3275_s13  ;;  %s2937_s12 = scalar_lea.vmem %s4076_s1, 1024 }
  0xa5   : > { %p2938_p4 = scmp.ne.s32.totalorder %s4076_s1, %s2937_s12  ;;  %s3024_s21 = smov [#allocation10]  }
  0xa6   : > { %s2941_s29 = sshll.u32 %s3024_s21, 4  ;;  %s2942_s29 = int_to_ptr.vmem [resolvable:$false] %s2941_s29 }
  0xa7   : > { %709 = vmatpush1.bf16.msra.mxu1 %v2644_v12  ;;  %1633 = vmatpush1.bf16.msra.mxu0 %v2687_v42  ;;  %p2939_p6 = pnand %p2938_p4, %p3224_p8  ;;  %s2943_s30 = scalar_lea.vmem %s2942_s29, 2048 }
  0xa8   : > { %710 = vmatprep.subr.bf16.mxu1 %v2645_v13  ;;  %1634 = vmatprep.subr.bf16.mxu0 %v2688_v43  ;;  %v3332_v13 = vsub.s32 3, %v495_v61  ;;  %p2944_p3 = scmp.lt.s32.totalorder %s4076_s1, %s2942_s29  ;;  %p2945_p7 = scmp.lt.s32.totalorder %s2943_s30, %s2937_s12 }
  0xa9   : > { %s4081_s26 = scalar_lea.hbm %s4193_s24, %s2468_s27  ;;  %p2940_p13 = pneg %p2939_p6 }
  0xaa   : > { %p2946_p9 = por %p2945_p7, %p2944_p3 }
  0xab   : > { %711 = vmatpush1.bf16.msra.mxu1 %v2647_v14  ;;  %1635 = vmatpush1.bf16.msra.mxu0 %v2690_v44 }
  0xac   : > { %712 = vmatprep.subr.bf16.mxu1 %v2648_v15  ;;  %1636 = vmatprep.subr.bf16.mxu0 %v2691_v45  ;;  %p2947_p12 = pnand %p2946_p9, %p2940_p13 }
  0xaf   : > { %713 = vmatpush1.bf16.msra.mxu1 %v2650_v16  ;;  %1637 = vmatpush1.bf16.msra.mxu0 %v2693_v46 }
  0xb0   : > { %771 = vmatprep.subr.bf16.mxu1 %v2654_v17  ;;  %1638 = vmatprep.subr.bf16.mxu0 %v2694_v47  ;;  %v3343_v17 = vrot.slane %v492_v3, %v3322_v9 }
  0xb2   : > { %731 = vmatmul.mubr.bf16.vlgmr.msra.gmra.mrb[0].mxu1 %v2651_v18 }
  0xb3   : > { %772 = vmatpush1.bf16.msra.mxu1 %v2652_v19  ;;  %740 = vmatprep.mubr.bf16.mxu1 %v3023_v0 }
  0xb4   : > { %773 = vmatprep.subr.bf16.mxu1 %v2657_v20  ;;  %1639 = vmatpush1.bf16.msra.mxu0 %v2696_v48  ;;  %v3350_v20 = vrot.slane %v492_v3, %v3332_v13 }
  0xb5   : > { %1640 = vmatprep.subr.bf16.mxu0 %v2697_v49 }
  0xb7   : > { %774 = vmatpush1.bf16.msra.mxu1 %v2655_v21 }
  0xb8   : > { %775 = vmatprep.subr.bf16.mxu1 %v2661_v22  ;;  %1641 = vmatpush1.bf16.msra.mxu0 %v2699_v50 }
  0xb9   : > { %1642 = vmatprep.subr.bf16.mxu0 %v2700_v51 }
  0xba   : > { %741 = vmatmul.mubr.bf16.gmra.mrb[4].mxu1 %v2658_v23 }
  0xbb   : > { %776 = vmatpush1.bf16.msra.mxu1 %v2659_v24  ;;  %750 = vmatprep.mubr.bf16.mxu1 %v3023_v0 }
  0xbc   : > { %777 = vmatprep.subr.bf16.mxu1 %v2664_v25 }
  0xbf   : > { %778 = vmatpush1.bf16.msra.mxu1 %v2662_v26 }
  0xc0   : > { %779 = vmatprep.subr.bf16.mxu1 %v2668_v27 }
  0xc2   : > { %751 = vmatmul.mubr.bf16.gmra.mrb[8].mxu1 %v2665_v28 }
  0xc3   : > { %780 = vmatpush1.bf16.msra.mxu1 %v2666_v29  ;;  %760 = vmatprep.mubr.bf16.mxu1 %v3023_v0 }
  0xc4   : > { %781 = vmatprep.subr.bf16.mxu1 %v2671_v30 }
  0xc7   : > { %782 = vmatpush1.bf16.msra.mxu1 %v2669_v31 }
  0xc8   : > { %783 = vmatprep.subr.bf16.mxu1 %v2675_v32 }
  0xca   : > { %761 = vmatmul.mubr.bf16.gmra.mrb[12].mxu1 %v2672_v33 }
  0xcb   : > { %784 = vmatpush1.bf16.msra.mxu1 %v2673_v34  ;;  %803 = vmatprep.mubr.bf16.mxu1 %v3023_v0 }
  0xcc   : > { %785 = vmatprep.subr.bf16.mxu1 %v2678_v35 }
  0xcf   : > { %786 = vmatpush1.bf16.msra.mxu1 %v2676_v36 }
  0xd2   : > { %804 = vmatmul.mubr.bf16.vlgmr.msra.gmra.mrb[16].mxu1 %v2651_v18 }
  0xd3   : > { %813 = vmatprep.mubr.bf16.mxu1 %v3023_v0 }
  0xda   : > { %814 = vmatmul.mubr.bf16.gmra.mrb[20].mxu1 %v2658_v23 }
  0xdb   : > { %823 = vmatprep.mubr.bf16.mxu1 %v3023_v0 }
  0xe2   : > { %824 = vmatmul.mubr.bf16.gmra.mrb[24].mxu1 %v2665_v28 }
  0xe3   : > { %833 = vmatprep.mubr.bf16.mxu1 %v3023_v0  ;;  %v3305_v0 = vsub.s32 0, %v495_v61 }
  0xe5   : > { %4168 = vst [vmem:[#allocation17_spill] sm:$0xff] %v3305_v0  ;;  %v3313_v5 = vrot.slane %v492_v3, %v3305_v0 }
  0xea   : > { %834 = vmatmul.mubr.bf16.gmra.mrb[28].mxu1 %v2672_v33 }
 0x185   : > { %v732_v52 = vpop.f32.mrb[0].mxu1 }
 0x186   : > { %v734_v53 = vpop.f32.mrb[1].mxu1  ;;  %v3325_v10 = vadd.f32 %v732_v52, %v3313_v5 }
 0x187   : > { %v736_v54 = vpop.f32.mrb[2].mxu1  ;;  %v3328_v11 = vadd.f32 %v734_v53, %v3316_v6 }
 0x188   : > { %v738_v55 = vpop.f32.mrb[3].mxu1  ;;  %v3335_v14 = vadd.f32 %v736_v54, %v3313_v5  ;;  %v886_v18 = vmul.f32 %v3325_v10, %v3325_v10 }
 0x189   : > { %v3338_v15 = vadd.f32 %v738_v55, %v3316_v6  ;;  %v887_v19 = vmul.f32 %v3328_v11, %v3328_v11  ;;  %v846_v29 = vadd.f32 %v3328_v11, %v3325_v10 }
 0x18a   : > { %v890_v21 = vmul.f32 %v3335_v14, %v3335_v14 }
 0x18b   : > { %v891_v22 = vmul.f32 %v3338_v15, %v3338_v15  ;;  %v851_v26 = vadd.f32 %v3338_v15, %v3335_v14  ;;  %v918_v34 = vadd.f32 %v887_v19, %v886_v18 }
 0x18d   : > { %v742_v56 = vpop.f32.mrb[4].mxu1  ;;  %v923_v39 = vadd.f32 %v891_v22, %v890_v21 }
 0x18e   : > { %v744_v57 = vpop.f32.mrb[5].mxu1  ;;  %v3357_v23 = vadd.f32 %v742_v56, %v3313_v5 }
 0x18f   : > { %v746_v59 = vpop.f32.mrb[6].mxu1  ;;  %v3360_v24 = vadd.f32 %v744_v57, %v3316_v6 }
 0x190   : > { %v748_v60 = vpop.f32.mrb[7].mxu1  ;;  %v3370_v30 = vadd.f32 %v746_v59, %v3313_v5  ;;  %v894_v40 = vmul.f32 %v3357_v23, %v3357_v23 }
 0x191   : > { %v3373_v31 = vadd.f32 %v748_v60, %v3316_v6  ;;  %v895_v41 = vmul.f32 %v3360_v24, %v3360_v24  ;;  %v856_v53 = vadd.f32 %v3360_v24, %v3357_v23 }
 0x192   : > { %v898_v48 = vmul.f32 %v3370_v30, %v3370_v30 }
 0x193   : > { %v899_v49 = vmul.f32 %v3373_v31, %v3373_v31  ;;  %v861_v57 = vadd.f32 %v3373_v31, %v3370_v30  ;;  %v928_v61 = vadd.f32 %v895_v41, %v894_v40 }
 0x195   : > { %v752_v62 = vpop.f32.mrb[8].mxu1  ;;  %v933_v19 = vadd.f32 %v899_v49, %v898_v48 }
 0x196   : > { %v754_v63 = vpop.f32.mrb[9].mxu1  ;;  %v3406_v54 = vadd.f32 %v752_v62, %v3313_v5 }
 0x197   : > { %v756_v2 = vpop.f32.mrb[10].mxu1  ;;  %v3409_v55 = vadd.f32 %v754_v63, %v3316_v6 }
 0x198   : > { %v758_v4 = vpop.f32.mrb[11].mxu1  ;;  %v3418_v3 = vadd.f32 %v756_v2, %v3313_v5 }
 0x199   : > { %v3421_v62 = vadd.f32 %v758_v4, %v3316_v6  ;;  %v902_v4 = vmul.f32 %v3406_v54, %v3406_v54 }
 0x19b   : > { %v907_v40 = vmul.f32 %v3421_v62, %v3421_v62 }
 0x19d   : > { %v3318_v7 = vpop.f32.mrb[12].mxu1 }
 0x19e   : > { %v3320_v8 = vpop.f32.mrb[13].mxu1 }
 0x19f   : > { %v3330_v12 = vpop.f32.mrb[14].mxu1 }
 0x1a0   : > { %v3340_v16 = vpop.f32.mrb[15].mxu1 }
 0x1a5   : > { %v805_v25 = vpop.f32.mrb[16].mxu1 }
 0x1a6   : > { %v3365_v27 = vadd.f32 %v805_v25, %v3343_v17  ;;  %v807_v28 = vpop.f32.mrb[17].mxu1 }
 0x1a7   : > { %v3376_v32 = vadd.f32 %v807_v28, %v3350_v20  ;;  %v809_v33 = vpop.f32.mrb[18].mxu1  ;;  %v903_v28 = vmul.f32 %v3409_v55, %v3409_v55 }
 0x1a8   : > { %v3379_v35 = vadd.f32 %v809_v33, %v3343_v17  ;;  %v811_v36 = vpop.f32.mrb[19].mxu1  ;;  %v847_v37 = vadd.f32 %v846_v29, %v3365_v27  ;;  %v888_v38 = vmul.f32 %v3365_v27, %v3365_v27 }
 0x1a9   : > { %v3389_v42 = vadd.f32 %v811_v36, %v3350_v20  ;;  %v889_v43 = vmul.f32 %v3376_v32, %v3376_v32 }
 0x1aa   : > { %v892_v44 = vmul.f32 %v3379_v35, %v3379_v35  ;;  %v848_v45 = vadd.f32 %v847_v37, %v3376_v32  ;;  %v919_v46 = vadd.f32 %v918_v34, %v888_v38  ;;  %v852_v47 = vadd.f32 %v851_v26, %v3379_v35 }
 0x1ab   : > { %v893_v51 = vmul.f32 %v3389_v42, %v3389_v42 }
 0x1ac   : > { %849 = vadd.xlane.f32.xlu0 %v848_v45  ;;  %v920_v50 = vadd.f32 %v919_v46, %v889_v43  ;;  %v924_v52 = vadd.f32 %v923_v39, %v892_v44  ;;  %v853_v60 = vadd.f32 %v852_v47, %v3389_v42  ;;  %v906_v39 = vmul.f32 %v3418_v3, %v3418_v3 }
 0x1ad   : > { %v815_v56 = vpop.f32.mrb[20].mxu1  ;;  %v866_v45 = vadd.f32 %v3409_v55, %v3406_v54  ;;  %v871_v47 = vadd.f32 %v3421_v62, %v3418_v3 }
 0x1ae   : > { %v3414_v58 = vadd.f32 %v815_v56, %v3343_v17  ;;  %v817_v59 = vpop.f32.mrb[21].mxu1  ;;  %921 = vadd.xlane.f32.xlu1 %v920_v50  ;;  %v925_v26 = vadd.f32 %v924_v52, %v893_v51  ;;  %v938_v51 = vadd.f32 %v903_v28, %v902_v4  ;;  %v3461_v52 = vadd.f32 %v3318_v7, %v3313_v5 }
 0x1af   : > { %v3424_v63 = vadd.f32 %v817_v59, %v3350_v20  ;;  %v819_v18 = vpop.f32.mrb[22].mxu1  ;;  %v943_v59 = vadd.f32 %v907_v40, %v906_v39 }
 0x1b0   : > { %v896_v21 = vmul.f32 %v3414_v58, %v3414_v58  ;;  %v3429_v22 = vadd.f32 %v819_v18, %v3343_v17  ;;  %854 = vadd.xlane.f32.xlu0 %v853_v60  ;;  %v821_v25 = vpop.f32.mrb[23].mxu1  ;;  %v857_v2 = vadd.f32 %v856_v53, %v3414_v58  ;;  %v3465_v53 = vadd.f32 %v3320_v8, %v3316_v6 }
 0x1b1   : > { %v3437_v29 = vadd.f32 %v821_v25, %v3350_v20  ;;  %v897_v33 = vmul.f32 %v3424_v63, %v3424_v63  ;;  %v3478_v8 = vadd.f32 %v3330_v12, %v3313_v5  ;;  %v3482_v25 = vadd.f32 %v3340_v16, %v3316_v6  ;;  %v2703_v16 = vld [vmem:[#allocation7 + $0x84] ss:$8 sps:$4 sm:$0xff]  }
 0x1b2   : > { %v900_v34 = vmul.f32 %v3429_v22, %v3429_v22  ;;  %926 = vadd.xlane.f32.xlu1 %v925_v26  ;;  %v858_v36 = vadd.f32 %v857_v2, %v3424_v63  ;;  %v862_v37 = vadd.f32 %v861_v57, %v3429_v22  ;;  %v929_v38 = vadd.f32 %v928_v61, %v896_v21  ;;  %v2702_v21 = vld [vmem:[#allocation7 + $0x70] ss:$8 sps:$4 sm:$0xff]  }
 0x1b3   : > { %v901_v43 = vmul.f32 %v3437_v29, %v3437_v29  ;;  %v910_v12 = vmul.f32 %v3461_v52, %v3461_v52  ;;  %v911_v6 = vmul.f32 %v3465_v53, %v3465_v53  ;;  %1643 = vmatpush1.bf16.msra.mxu0 %v2702_v21  ;;  %v914_v39 = vmul.f32 %v3478_v8, %v3478_v8  ;;  %v2708_v21 = vld [vmem:[#allocation7 + $0x90] ss:$8 sps:$4 sm:$0xff]  }
 0x1b4   : > { %859 = vadd.xlane.f32.xlu0 %v858_v36  ;;  %v863_v41 = vadd.f32 %v862_v37, %v3437_v29  ;;  %v934_v44 = vadd.f32 %v933_v19, %v900_v34  ;;  %v930_v50 = vadd.f32 %v929_v38, %v897_v33  ;;  %v2705_v38 = vld [vmem:[#allocation7 + $0x80] ss:$8 sps:$4 sm:$0xff]   ;;  %v915_v40 = vmul.f32 %v3482_v25, %v3482_v25 }
 0x1b5   : > { %v825_v46 = vpop.f32.mrb[24].mxu1  ;;  %1644 = vmatprep.subr.bf16.mxu0 %v2703_v16 }
 0x1b6   : > { %v3457_v48 = vadd.f32 %v825_v46, %v3343_v17  ;;  %v827_v49 = vpop.f32.mrb[25].mxu1  ;;  %864 = vadd.xlane.f32.xlu1 %v863_v41  ;;  %v935_v19 = vadd.f32 %v934_v44, %v901_v43  ;;  %v876_v43 = vadd.f32 %v3465_v53, %v3461_v52 }
 0x1b7   : > { %v3468_v56 = vadd.f32 %v827_v49, %v3350_v20  ;;  %v829_v57 = vpop.f32.mrb[26].mxu1  ;;  %1645 = vmatpush1.bf16.msra.mxu0 %v2705_v38  ;;  %v2712_v38 = vld [vmem:[#allocation7 + $0xb4] ss:$8 sps:$4 sm:$0xff]  }
 0x1b8   : > { %v904_v60 = vmul.f32 %v3457_v48, %v3457_v48  ;;  %v3473_v61 = vadd.f32 %v829_v57, %v3343_v17  ;;  %931 = vadd.xlane.f32.xlu0 %v930_v50  ;;  %v831_v18 = vpop.f32.mrb[27].mxu1  ;;  %v867_v7 = vadd.f32 %v866_v45, %v3457_v48  ;;  %v2706_v57 = vld [vmem:[#allocation7 + $0x94] ss:$8 sps:$4 sm:$0xff]  }
 0x1b9   : > { %v3485_v26 = vadd.f32 %v831_v18, %v3350_v20  ;;  %v905_v2 = vmul.f32 %v3468_v56, %v3468_v56  ;;  %1646 = vmatprep.subr.bf16.mxu0 %v2706_v57  ;;  %v2726_v57 = vld [vmem:[#allocation7 + $0xf0] ss:$8 sps:$4 sm:$0xff]  }
 0x1ba   : > { %v908_v4 = vmul.f32 %v3473_v61, %v3473_v61  ;;  %936 = vadd.xlane.f32.xlu1 %v935_v19  ;;  %v868_v28 = vadd.f32 %v867_v7, %v3468_v56  ;;  %v872_v33 = vadd.f32 %v871_v47, %v3473_v61  ;;  %v939_v5 = vadd.f32 %v938_v51, %v904_v60 }
 0x1bb   : > { %v909_v36 = vmul.f32 %v3485_v26, %v3485_v26  ;;  %v881_v47 = vadd.f32 %v3482_v25, %v3478_v8  ;;  %v948_v51 = vadd.f32 %v911_v6, %v910_v12  ;;  %1647 = vmatpush1.bf16.msra.mxu0 %v2708_v21  ;;  %v2709_v6 = vld [vmem:[#allocation7 + $0xa4] ss:$8 sps:$4 sm:$0xff]  }
 0x1bc   : > { %869 = vadd.xlane.f32.xlu0 %v868_v28  ;;  %v873_v34 = vadd.f32 %v872_v33, %v3485_v26  ;;  %v944_v37 = vadd.f32 %v943_v59, %v908_v4  ;;  %v940_v46 = vadd.f32 %v939_v5, %v905_v2  ;;  %v953_v28 = vadd.f32 %v915_v40, %v914_v39  ;;  %v2714_v40 = vld [vmem:[#allocation7 + $0xb0] ss:$8 sps:$4 sm:$0xff]  }
 0x1bd   : > { %v835_v41 = vpop.f32.mrb[28].mxu1  ;;  %1648 = vmatprep.subr.bf16.mxu0 %v2709_v6 }
 0x1be   : > { %v3507_v44 = vadd.f32 %v835_v41, %v3343_v17  ;;  %v837_v45 = vpop.f32.mrb[29].mxu1  ;;  %874 = vadd.xlane.f32.xlu1 %v873_v34  ;;  %v945_v19 = vadd.f32 %v944_v37, %v909_v36  ;;  %v2711_v36 = vld [vmem:[#allocation7 + $0xa0] ss:$8 sps:$4 sm:$0xff]   ;;  %v2715_v41 = vld [vmem:[#allocation7 + $0xc4] ss:$8 sps:$4 sm:$0xff]  }
 0x1bf   : > { %v3512_v49 = vadd.f32 %v837_v45, %v3350_v20  ;;  %v839_v50 = vpop.f32.mrb[30].mxu1  ;;  %1649 = vmatpush1.bf16.msra.mxu0 %v2711_v36  ;;  %v2718_v45 = vld [vmem:[#allocation7 + $0xd4] ss:$8 sps:$4 sm:$0xff]  }
 0x1c0   : > { %v912_v59 = vmul.f32 %v3507_v44, %v3507_v44  ;;  %v3517_v60 = vadd.f32 %v839_v50, %v3343_v17  ;;  %941 = vadd.xlane.f32.xlu0 %v940_v46  ;;  %v841_v18 = vpop.f32.mrb[31].mxu1  ;;  %v877_v7 = vadd.f32 %v876_v43, %v3507_v44  ;;  %1650 = vmatprep.subr.bf16.mxu0 %v2712_v38  ;;  %v2717_v43 = vld [vmem:[#allocation7 + $0xc0] ss:$8 sps:$4 sm:$0xff]   ;;  %v2720_v46 = vld [vmem:[#allocation7 + $0xd0] ss:$8 sps:$4 sm:$0xff]  }
 0x1c1   : > { %v3521_v2 = vadd.f32 %v841_v18, %v3350_v20  ;;  %v913_v4 = vmul.f32 %v3512_v49, %v3512_v49  ;;  %v2723_v50 = vld [vmem:[#allocation7 + $0xe0] ss:$8 sps:$4 sm:$0xff]  }
 0x1c2   : > { %v916_v33 = vmul.f32 %v3517_v60, %v3517_v60  ;;  %946 = vadd.xlane.f32.xlu1 %v945_v19  ;;  %v878_v17 = vadd.f32 %v877_v7, %v3512_v49  ;;  %v882_v5 = vadd.f32 %v881_v47, %v3517_v60  ;;  %v949_v12 = vadd.f32 %v948_v51, %v912_v59  ;;  %v2721_v47 = vld [vmem:[#allocation7 + $0xe4] ss:$8 sps:$4 sm:$0xff]   ;;  %v2724_v51 = vld [vmem:[#allocation7 + $0xf4] ss:$8 sps:$4 sm:$0xff]  }
 0x1c3   : > { %v917_v16 = vmul.f32 %v3521_v2, %v3521_v2  ;;  %1651 = vmatpush1.bf16.msra.mxu0 %v2714_v40  ;;  %v2729_v59 = vld [vmem:[#allocation7 + $0x104] ss:$8 sps:$4 sm:$0xff]  }
 0x1c4   : > { %879 = vadd.xlane.f32.xlu0 %v878_v17  ;;  %v883_v20 = vadd.f32 %v882_v5, %v3521_v2  ;;  %v954_v34 = vadd.f32 %v953_v28, %v916_v33  ;;  %v950_v37 = vadd.f32 %v949_v12, %v913_v4  ;;  %1652 = vmatprep.subr.bf16.mxu0 %v2715_v41 }
 0x1c6   : > { %884 = vadd.xlane.f32.xlu1 %v883_v20  ;;  %v955_v39 = vadd.f32 %v954_v34, %v917_v16  ;;  %v844_v16 = vld [vmem:[%s4129_s3] sm:$0xf] }
 0x1c7   : > { %1653 = vmatpush1.bf16.msra.mxu0 %v2717_v43  ;;  %v845_v34 = vld [vmem:[%s4130_s4] sm:$0xf]  ;;  %v3549_v41 = vrot.slane %v844_v16, %v3307_v1  ;;  %v3552_v43 = vrot.slane %v844_v16, %v3322_v9 }
 0x1c8   : > { %951 = vadd.xlane.f32.xlu0 %v950_v37  ;;  %1654 = vmatprep.subr.bf16.mxu0 %v2718_v45  ;;  %v3555_v45 = vrot.slane %v845_v34, %v3307_v1 }
 0x1ca   : > { %956 = vadd.xlane.f32.xlu1 %v955_v39 }
 0x1cb   : > { %1655 = vmatpush1.bf16.msra.mxu0 %v2720_v46  ;;  %v3558_v46 = vrot.slane %v844_v16, %v3305_v0 }
 0x1cc   : > { %1656 = vmatprep.subr.bf16.mxu0 %v2721_v47 }
 0x1cf   : > { %1657 = vmatpush1.bf16.msra.mxu0 %v2723_v50 }
 0x1d0   : > { %1658 = vmatprep.subr.bf16.mxu0 %v2724_v51  ;;  %v3563_v51 = vrot.slane %v845_v34, %v3322_v9 }
 0x1d3   : > { %1659 = vmatpush1.bf16.msra.mxu0 %v2726_v57 }
 0x1d4   : > { %1701 = vmatprep.subr.bf16.mxu0 %v2729_v59 }
 0x239   : > { %v850_v18 = vpop.xlane.xlu0 %849 }
 0x23a   : > { %v3532_v19 = vmul.f32 0.001953125, %v850_v18  ;;  %v3568_v18 = vrot.slane %v845_v34, %v3305_v0 }
 0x23b   : > { %v922_v7 = vpop.xlane.xlu1 %921 }
 0x23c   : > { %v966_v21 = vmul.f32 0.001953125, %v922_v7  ;;  %v974_v4 = vmul.f32 %v3532_v19, %v3532_v19  ;;  %v1000_v57 = vsub.f32 %v3365_v27, %v3532_v19  ;;  %v3571_v7 = vrot.slane %v844_v16, %v3332_v13 }
 0x23d   : > { %v855_v28 = vpop.xlane.xlu0 %854  ;;  %v999_v9 = vsub.f32 %v3328_v11, %v3532_v19 }
 0x23e   : > { %v982_v33 = vsub.f32 %v966_v21, %v974_v4  ;;  %v3536_v17 = vmul.f32 0.001953125, %v855_v28  ;;  %v3574_v21 = vrot.slane %v845_v34, %v3332_v13  ;;  %v1001_v13 = vsub.f32 %v3376_v32, %v3532_v19 }
 0x23f   : > { %v927_v5 = vpop.xlane.xlu1 %926 }
 0x240   : > { %v990_v12 = vmax.f32 %v982_v33, 0.0  ;;  %v967_v6 = vmul.f32 0.001953125, %v927_v5  ;;  %v975_v20 = vmul.f32 %v3536_v17, %v3536_v17 }
 0x241   : > { %v860_v36 = vpop.xlane.xlu0 %859 }
 0x242   : > { %v1030_v37 = vadd.f32 1e-05, %v990_v12  ;;  %v983_v38 = vsub.f32 %v967_v6, %v975_v20  ;;  %v3546_v39 = vmul.f32 0.001953125, %v860_v36  ;;  %v1003_v12 = vsub.f32 %v3338_v15, %v3536_v17 }
 0x243   : > { %v865_v40 = vpop.xlane.xlu1 %864  ;;  %v998_v6 = vsub.f32 %v3325_v10, %v3532_v19  ;;  %v1002_v36 = vsub.f32 %v3335_v14, %v3536_v17 }
 0x244   : > { %2791 = vrsqrt.f32 %v1030_v37  ;;  %v991_v47 = vmax.f32 %v983_v38, 0.0  ;;  %v3560_v50 = vmul.f32 0.001953125, %v865_v40  ;;  %v976_v28 = vmul.f32 %v3546_v39, %v3546_v39 }
 0x245   : > { %v932_v59 = vpop.xlane.xlu0 %931 }
 0x246   : > { %v1031_v4 = vadd.f32 1e-05, %v991_v47  ;;  %v968_v33 = vmul.f32 0.001953125, %v932_v59  ;;  %v977_v16 = vmul.f32 %v3560_v50, %v3560_v50 }
 0x247   : > { %v937_v5 = vpop.xlane.xlu1 %936 }
 0x248   : > { %2793 = vrsqrt.f32 %v1031_v4  ;;  %v984_v20 = vsub.f32 %v968_v33, %v976_v28  ;;  %v969_v34 = vmul.f32 0.001953125, %v937_v5 }
 0x249   : > { %v870_v11 = vpop.xlane.xlu0 %869 }
 0x24a   : > { %v992_v32 = vmax.f32 %v984_v20, 0.0  ;;  %v985_v19 = vsub.f32 %v969_v34, %v977_v16  ;;  %v3598_v38 = vmul.f32 0.001953125, %v870_v11 }
 0x24b   : > { %v875_v47 = vpop.xlane.xlu1 %874 }
 0x24c   : > { %v1032_v33 = vadd.f32 1e-05, %v992_v32  ;;  %v993_v5 = vmax.f32 %v985_v19, 0.0  ;;  %v3610_v20 = vmul.f32 0.001953125, %v875_v47  ;;  %v978_v34 = vmul.f32 %v3598_v38, %v3598_v38 }
 0x24d   : > { %v942_v11 = vpop.xlane.xlu0 %941 }
 0x24e   : > { %v2792_v32 = vpop.eup %2791  ;;  %2795 = vrsqrt.f32 %v1032_v33  ;;  %v1033_v19 = vadd.f32 1e-05, %v993_v5  ;;  %v970_v47 = vmul.f32 0.001953125, %v942_v11  ;;  %v979_v27 = vmul.f32 %v3610_v20, %v3610_v20 }
 0x24f   : > { %v947_v59 = vpop.xlane.xlu1 %946  ;;  %v1047_v14 = vmul.f32 %v2792_v32, %v999_v9  ;;  %v1046_v10 = vmul.f32 %v2792_v32, %v998_v6  ;;  %v1049_v28 = vmul.f32 %v2792_v32, %v1001_v13  ;;  %v3632_v16 = vmul.f32 %v2792_v32, %v1000_v57 }
 0x250   : > { %2797 = vrsqrt.f32 %v1033_v19  ;;  %v986_v4 = vsub.f32 %v970_v47, %v978_v34  ;;  %v971_v15 = vmul.f32 0.001953125, %v947_v59 }
 0x251   : > { %v880_v37 = vpop.xlane.xlu0 %879  ;;  %v1100_v33 = vmul.f32 %v3549_v41, %v1047_v14  ;;  %v1099_v5 = vmul.f32 %v3558_v46, %v1046_v10 }
 0x252   : > { %v3634_v1 = vpop.eup %2793  ;;  %v994_v9 = vmax.f32 %v986_v4, 0.0  ;;  %v987_v6 = vsub.f32 %v971_v15, %v979_v27  ;;  %v3636_v0 = vmul.f32 0.001953125, %v880_v37  ;;  %v1102_v27 = vmul.f32 %v3571_v7, %v1049_v28 }
 0x253   : > { %v885_v13 = vpop.xlane.xlu1 %884  ;;  %v1051_v34 = vmul.f32 %v3634_v1, %v1003_v12  ;;  %v1153_v14 = vadd.f32 %v3555_v45, %v1100_v33  ;;  %v1050_v10 = vmul.f32 %v3634_v1, %v1002_v36  ;;  %v1152_v19 = vadd.f32 %v3568_v18, %v1099_v5 }
 0x254   : > { %v1034_v57 = vadd.f32 1e-05, %v994_v9  ;;  %v995_v32 = vmax.f32 %v987_v6, 0.0  ;;  %v3644_v47 = vmul.f32 0.001953125, %v885_v13  ;;  %v980_v37 = vmul.f32 %v3636_v0, %v3636_v0 }
 0x255   : > { %v952_v15 = vpop.xlane.xlu0 %951  ;;  %v1104_v4 = vmul.f32 %v3549_v41, %v1051_v34  ;;  %v1185_v59 = vmax.f32 %v1153_v14, 0.0  ;;  %v1103_v12 = vmul.f32 %v3558_v46, %v1050_v10  ;;  %v1184_v11 = vmax.f32 %v1152_v19, 0.0 }
 0x256   : > { %2799 = vrsqrt.f32 %v1034_v57  ;;  %v1035_v33 = vadd.f32 1e-05, %v995_v32  ;;  %v972_v36 = vmul.f32 0.001953125, %v952_v15  ;;  %v981_v5 = vmul.f32 %v3644_v47, %v3644_v47 }
 0x257   : > { %v957_v9 = vpop.xlane.xlu1 %956  ;;  %v1157_v6 = vadd.f32 %v3555_v45, %v1104_v4  ;;  %v1156_v28 = vadd.f32 %v3568_v18, %v1103_v12  ;;  %v4170_v32 = vsub.f32 %v3360_v24, %v3546_v39  ;;  %v4171_v4 = vsub.f32 %v3357_v23, %v3546_v39 }
 0x258   : > { %v3657_v40 = vpop.eup %2795  ;;  %2801 = vrsqrt.f32 %v1035_v33  ;;  %v988_v34 = vsub.f32 %v972_v36, %v980_v37  ;;  %v973_v14 = vmul.f32 0.001953125, %v957_v9  ;;  %v4172_v9 = vsub.f32 %v3389_v42, %v3536_v17 }
 0x259   : > { %v1189_v19 = vmax.f32 %v1157_v6, 0.0  ;;  %v1188_v57 = vmax.f32 %v1156_v28, 0.0  ;;  %v1055_v15 = vmul.f32 %v3657_v40, %v4170_v32  ;;  %v1054_v12 = vmul.f32 %v3657_v40, %v4171_v4  ;;  %v2727_v28 = vld [vmem:[#allocation7 + $0x100] ss:$8 sps:$4 sm:$0xff]  }
 0x25a   : > { %v3669_v13 = vpop.eup %2797  ;;  %v996_v33 = vmax.f32 %v988_v34, 0.0  ;;  %v989_v37 = vsub.f32 %v973_v14, %v981_v5  ;;  %v1053_v6 = vmul.f32 %v3634_v1, %v4172_v9  ;;  %v4173_v23 = vsub.f32 %v3373_v31, %v3560_v50  ;;  %v2732_v14 = vld [vmem:[#allocation7 + $0x114] ss:$8 sps:$4 sm:$0xff]  }
 0x25b   : > { %v1217_v24 = vpack.c.bf16 %v1189_v19, %v1185_v59  ;;  %v1216_v32 = vpack.c.bf16 %v1188_v57, %v1184_v11  ;;  %v1108_v10 = vmul.f32 %v3549_v41, %v1055_v15  ;;  %v4174_v36 = vsub.f32 %v3370_v30, %v3560_v50 }
 0x25c   : > { %v1059_v4 = vmul.f32 %v3669_v13, %v4173_v23  ;;  %v1036_v34 = vadd.f32 1e-05, %v996_v33  ;;  %v997_v5 = vmax.f32 %v989_v37, 0.0  ;;  %v1107_v9 = vmul.f32 %v3558_v46, %v1054_v12  ;;  %v2730_v33 = vld [vmem:[#allocation7 + $0x110] ss:$8 sps:$4 sm:$0xff]  }
 0x25d   : > { %v1058_v42 = vmul.f32 %v3669_v13, %v4174_v36  ;;  %1660 = vmatprep.mubr.bf16.mxu0 %v1217_v24  ;;  %v1161_v59 = vadd.f32 %v3555_v45, %v1108_v10  ;;  %v1106_v31 = vmul.f32 %v3571_v7, %v1053_v6  ;;  %v3691_v19 = vadd.f32 %v3574_v21, %v1102_v27  ;;  %v2735_v6 = vld [vmem:[#allocation7 + $0x124] ss:$8 sps:$4 sm:$0xff]  }
 0x25e   : > { %v1112_v11 = vmul.f32 %v3549_v41, %v1059_v4  ;;  %2803 = vrsqrt.f32 %v1036_v34  ;;  %v1037_v57 = vadd.f32 1e-05, %v997_v5  ;;  %1661 = vmatmul.mubr.bf16.vlgmr.msra.gmra.mrb[0].mxu0 %v1216_v32  ;;  %v1160_v30 = vadd.f32 %v3568_v18, %v1107_v9 }
 0x25f   : > { %v1111_v15 = vmul.f32 %v3558_v46, %v1058_v42  ;;  %1702 = vmatpush1.bf16.msra.mxu0 %v2727_v28  ;;  %v1193_v37 = vmax.f32 %v1161_v59, 0.0  ;;  %v1026_v10 = vsub.f32 %v3478_v8, %v3644_v47  ;;  %v3699_v36 = vadd.f32 %v3574_v21, %v1106_v31 }
 0x260   : > { %v1165_v12 = vadd.f32 %v3555_v45, %v1112_v11  ;;  %v3701_v27 = vpop.eup %2799  ;;  %2805 = vrsqrt.f32 %v1037_v57  ;;  %1703 = vmatprep.subr.bf16.mxu0 %v2732_v14  ;;  %v1187_v32 = vmax.f32 %v3691_v19, 0.0  ;;  %v4175_v28 = vsub.f32 %v3379_v35, %v3536_v17  ;;  %v2733_v57 = vld [vmem:[#allocation7 + $0x120] ss:$8 sps:$4 sm:$0xff]  }
 0x261   : > { %v1164_v24 = vadd.f32 %v3568_v18, %v1111_v15  ;;  %v1192_v34 = vmax.f32 %v1160_v30, 0.0  ;;  %v4176_v5 = vsub.f32 %v3409_v55, %v3598_v38  ;;  %v4177_v14 = vsub.f32 %v3406_v54, %v3598_v38 }
 0x262   : > { %v1052_v23 = vmul.f32 %v3634_v1, %v4175_v28  ;;  %v1197_v4 = vmax.f32 %v1165_v12, 0.0  ;;  %v3717_v11 = vpop.eup %2801  ;;  %v1101_v35 = vmul.f32 %v3552_v43, %v3632_v16  ;;  %v4178_v17 = vsub.f32 %v3424_v63, %v3546_v39  ;;  %v2738_v63 = vld [vmem:[#allocation7 + $0x134] ss:$8 sps:$4 sm:$0xff]  }
 0x263   : > { %v1063_v42 = vmul.f32 %v3701_v27, %v4176_v5  ;;  %v1062_v9 = vmul.f32 %v3701_v27, %v4177_v14  ;;  %v1196_v59 = vmax.f32 %v1164_v24, 0.0  ;;  %1704 = vmatpush1.bf16.msra.mxu0 %v2730_v33  ;;  %v4179_v54 = vsub.f32 %v3421_v62, %v3610_v20 }
 0x264   : > { %v1105_v1 = vmul.f32 %v3552_v43, %v1052_v23  ;;  %v1057_v55 = vmul.f32 %v3657_v40, %v4178_v17  ;;  %v1221_v31 = vpack.c.bf16 %v1197_v4, %v1193_v37  ;;  %v4180_v16 = vsub.f32 %v3418_v3, %v3610_v20  ;;  %1705 = vmatprep.subr.bf16.mxu0 %v2735_v6 }
 0x265   : > { %v1067_v15 = vmul.f32 %v3717_v11, %v4179_v54  ;;  %v1116_v30 = vmul.f32 %v3549_v41, %v1063_v42  ;;  %v1220_v24 = vpack.c.bf16 %v1196_v59, %v1192_v34  ;;  %v1115_v28 = vmul.f32 %v3558_v46, %v1062_v9  ;;  %v2736_v9 = vld [vmem:[#allocation7 + $0x130] ss:$8 sps:$4 sm:$0xff]   ;;  %v2741_v54 = vld [vmem:[#allocation7 + $0x144] ss:$8 sps:$4 sm:$0xff]  }
 0x266   : > { %v1066_v12 = vmul.f32 %v3717_v11, %v4180_v16  ;;  %v1191_v33 = vmax.f32 %v3699_v36, 0.0  ;;  %v1154_v37 = vadd.f32 %v3563_v51, %v1101_v35  ;;  %1670 = vmatprep.mubr.bf16.mxu0 %v1221_v31  ;;  %v1158_v3 = vadd.f32 %v3563_v51, %v1105_v1 }
 0x267   : > { %v1120_v62 = vmul.f32 %v3549_v41, %v1067_v15  ;;  %v1169_v23 = vadd.f32 %v3555_v45, %v1116_v30  ;;  %1671 = vmatmul.mubr.bf16.gmra.mrb[4].mxu0 %v1220_v24  ;;  %v1168_v6 = vadd.f32 %v3568_v18, %v1115_v28  ;;  %v4181_v5 = vsub.f32 %v3437_v29, %v3560_v50 }
 0x268   : > { %v1119_v4 = vmul.f32 %v3558_v46, %v1066_v12  ;;  %v1186_v34 = vmax.f32 %v1154_v37, 0.0  ;;  %v1110_v14 = vmul.f32 %v3571_v7, %v1057_v55  ;;  %1706 = vmatpush1.bf16.msra.mxu0 %v2733_v57  ;;  %v1190_v31 = vmax.f32 %v1158_v3, 0.0  ;;  %v3750_v1 = vpop.eup %2803  ;;  %v2739_v3 = vld [vmem:[#allocation7 + $0x140] ss:$8 sps:$4 sm:$0xff]  }
 0x269   : > { %v1061_v42 = vmul.f32 %v3669_v13, %v4181_v5  ;;  %v1173_v59 = vadd.f32 %v3555_v45, %v1120_v62  ;;  %v1201_v35 = vmax.f32 %v1169_v23, 0.0  ;;  %1707 = vmatprep.subr.bf16.mxu0 %v2738_v63  ;;  %v1200_v15 = vmax.f32 %v1168_v6, 0.0 }
 0x26a   : > { %v1172_v17 = vadd.f32 %v3568_v18, %v1119_v4  ;;  %v1163_v29 = vadd.f32 %v3574_v21, %v1110_v14  ;;  %v4182_v55 = vsub.f32 %v3414_v58, %v3546_v39  ;;  %v4183_v24 = vsub.f32 %v3465_v53, %v3636_v0  ;;  %v3766_v62 = vpop.eup %2805 }
 0x26b   : > { %v1114_v30 = vmul.f32 %v3571_v7, %v1061_v42  ;;  %v1205_v16 = vmax.f32 %v1173_v59, 0.0  ;;  %v4184_v63 = vsub.f32 %v3461_v52, %v3636_v0  ;;  %v3768_v23 = vpack.c.bf16 %v1190_v31, %v1186_v34  ;;  %v2744_v42 = vld [vmem:[#allocation7 + $0x154] ss:$8 sps:$4 sm:$0xff]  }
 0x26c   : > { %v1056_v57 = vmul.f32 %v3657_v40, %v4182_v55  ;;  %v1204_v12 = vmax.f32 %v1172_v17, 0.0  ;;  %v1071_v28 = vmul.f32 %v3750_v1, %v4183_v24  ;;  %v1195_v39 = vmax.f32 %v1163_v29, 0.0  ;;  %1708 = vmatpush1.bf16.msra.mxu0 %v2736_v9 }
 0x26d   : > { %v1070_v37 = vmul.f32 %v3750_v1, %v4184_v63  ;;  %v1167_v58 = vadd.f32 %v3574_v21, %v1114_v30  ;;  %v4185_v40 = vsub.f32 %v3429_v22, %v3560_v50  ;;  %v1225_v53 = vpack.c.bf16 %v1205_v16, %v1201_v35  ;;  %1709 = vmatprep.subr.bf16.mxu0 %v2741_v54 }
 0x26e   : > { %v1224_v6 = vpack.c.bf16 %v1204_v12, %v1200_v15  ;;  %v4186_v52 = vsub.f32 %v3482_v25, %v3644_v47  ;;  %v1124_v34 = vmul.f32 %v3549_v41, %v1071_v28  ;;  %v1074_v22 = vmul.f32 %v3766_v62, %v1026_v10 }
 0x26f   : > { %v1060_v4 = vmul.f32 %v3669_v13, %v4185_v40  ;;  %v1123_v50 = vmul.f32 %v3558_v46, %v1070_v37  ;;  %v1199_v13 = vmax.f32 %v1167_v58, 0.0  ;;  %v1109_v14 = vmul.f32 %v3552_v43, %v1056_v57  ;;  %1680 = vmatprep.mubr.bf16.mxu0 %v1225_v53  ;;  %v2745_v53 = vld [vmem:[#allocation7 + $0x160] ss:$8 sps:$4 sm:$0xff]  }
 0x270   : > { %v1075_v5 = vmul.f32 %v3766_v62, %v4186_v52  ;;  %v1177_v25 = vadd.f32 %v3555_v45, %v1124_v34  ;;  %v4187_v35 = vsub.f32 %v3468_v56, %v3598_v38  ;;  %1681 = vmatmul.mubr.bf16.gmra.mrb[8].mxu0 %v1224_v6  ;;  %v1127_v8 = vmul.f32 %v3558_v46, %v1074_v22  ;;  %v2747_v46 = vld [vmem:[#allocation7 + $0x164] ss:$8 sps:$4 sm:$0xff]  }
 0x271   : > { %v1113_v59 = vmul.f32 %v3552_v43, %v1060_v4  ;;  %v1176_v10 = vadd.f32 %v3568_v18, %v1123_v50  ;;  %v3795_v31 = vpack.c.bf16 %v1199_v13, %v1195_v39  ;;  %v1162_v54 = vadd.f32 %v3563_v51, %v1109_v14  ;;  %1710 = vmatpush1.bf16.msra.mxu0 %v2739_v3  ;;  %v2753_v13 = vld [vmem:[#allocation7 + $0x184] ss:$8 sps:$4 sm:$0xff]  }
 0x272   : > { %v1128_v9 = vmul.f32 %v3549_v41, %v1075_v5  ;;  %v1065_v17 = vmul.f32 %v3701_v27, %v4187_v35  ;;  %v2742_v41 = vld [vmem:[#allocation7 + $0x150] ss:$8 sps:$4 sm:$0xff]   ;;  %v1209_v30 = vmax.f32 %v1177_v25, 0.0  ;;  %v4188_v56 = vsub.f32 %v3485_v26, %v3610_v20  ;;  %1711 = vmatprep.subr.bf16.mxu0 %v2744_v42 }
 0x273   : > { %v1166_v29 = vadd.f32 %v3563_v51, %v1113_v59  ;;  %v1180_v57 = vadd.f32 %v3568_v18, %v1127_v8  ;;  %v1208_v16 = vmax.f32 %v1176_v10, 0.0  ;;  %v1194_v12 = vmax.f32 %v1162_v54, 0.0  ;;  %v2756_v10 = vld [vmem:[#allocation7 + $0x194] ss:$8 sps:$4 sm:$0xff]  }
 0x274   : > { %v1181_v15 = vadd.f32 %v3555_v45, %v1128_v9  ;;  %v1069_v55 = vmul.f32 %v3717_v11, %v4188_v56  ;;  %v1118_v24 = vmul.f32 %v3571_v7, %v1065_v17  ;;  %v1020_v37 = vsub.f32 %v3473_v61, %v3610_v20  ;;  %v2751_v17 = vld [vmem:[#allocation7 + $0x180] ss:$8 sps:$4 sm:$0xff]  }
 0x275   : > { %v1198_v63 = vmax.f32 %v1166_v29, 0.0  ;;  %v1212_v58 = vmax.f32 %v1180_v57, 0.0  ;;  %v4189_v39 = vsub.f32 %v3457_v48, %v3598_v38  ;;  %v1025_v18 = vsub.f32 %v3512_v49, %v3636_v0  ;;  %1712 = vmatpush1.bf16.msra.mxu0 %v2742_v41  ;;  %v2750_v38 = vld [vmem:[#allocation7 + $0x174] ss:$8 sps:$4 sm:$0xff]   ;;  %v2759_v29 = vld [vmem:[#allocation7 + $0x1a4] ss:$8 sps:$4 sm:$0xff]  }
 0x276   : > { %v1213_v28 = vmax.f32 %v1181_v15, 0.0  ;;  %v1122_v45 = vmul.f32 %v3571_v7, %v1069_v55  ;;  %v1171_v26 = vadd.f32 %v3574_v21, %v1118_v24  ;;  %v1068_v61 = vmul.f32 %v3717_v11, %v1020_v37  ;;  %1713 = vmatprep.subr.bf16.mxu0 %v2747_v46  ;;  %v2762_v55 = vld [vmem:[#allocation7 + $0x1b4] ss:$8 sps:$4 sm:$0xff]   ;;  %v2760_v46 = vld [vmem:[#allocation7 + $0x1b0] ss:$8 sps:$4 sm:$0xff]  }
 0x277   : > { %v1064_v40 = vmul.f32 %v3701_v27, %v4189_v39  ;;  %v3816_v3 = vpack.c.bf16 %v1198_v63, %v1194_v12  ;;  %v1228_v20 = vpack.c.bf16 %v1212_v58, %v1208_v16  ;;  %v1219_v48 = vpack.c.bf16 %v1191_v33, %v1187_v32  ;;  %v2765_v57 = vld [vmem:[#allocation7 + $0x1c4] ss:$8 sps:$4 sm:$0xff]   ;;  %v2763_v16 = vld [vmem:[#allocation7 + $0x1c0] ss:$8 sps:$4 sm:$0xff]   ;;  %v2766_v12 = vld [vmem:[#allocation7 + $0x1d0] ss:$8 sps:$4 sm:$0xff]  }
 0x278   : > { %v1229_v4 = vpack.c.bf16 %v1213_v28, %v1209_v30  ;;  %v1175_v6 = vadd.f32 %v3574_v21, %v1122_v45  ;;  %v1029_v49 = vsub.f32 %v3521_v2, %v3644_v47  ;;  %v1203_v52 = vmax.f32 %v1171_v26, 0.0  ;;  %v2748_v2 = vld [vmem:[#allocation7 + $0x170] ss:$8 sps:$4 sm:$0xff]   ;;  %v2771_v24 = vld [vmem:[#allocation7 + $0x1e4] ss:$8 sps:$4 sm:$0xff]  }
 0x279   : > { %v1117_v27 = vmul.f32 %v3552_v43, %v1064_v40  ;;  %v1121_v34 = vmul.f32 %v3552_v43, %v1068_v61  ;;  %v1073_v11 = vmul.f32 %v3750_v1, %v1025_v18  ;;  %v1024_v36 = vsub.f32 %v3507_v44, %v3636_v0  ;;  %1714 = vmatpush1.bf16.msra.mxu0 %v2745_v53  ;;  %v2769_v28 = vld [vmem:[#allocation7 + $0x1e0] ss:$8 sps:$4 sm:$0xff]   ;;  %v2774_v63 = vld [vmem:[#allocation7 + $0x1f4] ss:$8 sps:$4 sm:$0xff]   ;;  %v2772_v45 = vld [vmem:[#allocation7 + $0x1f0] ss:$8 sps:$4 sm:$0xff]  }
 0x27a   : > { %1690 = vmatprep.mubr.bf16.mxu0 %v1229_v4  ;;  %v1207_v5 = vmax.f32 %v1175_v6, 0.0  ;;  %v1077_v19 = vmul.f32 %v3766_v62, %v1029_v49  ;;  %v1028_v32 = vsub.f32 %v3517_v60, %v3644_v47  ;;  %1715 = vmatprep.subr.bf16.mxu0 %v2750_v38  ;;  %v1296_v37 = vld [vmem:[%s4132_s6] sm:$0x3]  ;;  %v4191_v39 = vld [vmem:[#allocation18_spill] sm:$0xff] }
 0x27b   : > { %1691 = vmatmul.mubr.bf16.gmra.mrb[12].mxu0 %v1228_v20  ;;  %v1170_v42 = vadd.f32 %v3563_v51, %v1117_v27  ;;  %v1174_v22 = vadd.f32 %v3563_v51, %v1121_v34  ;;  %v1126_v50 = vmul.f32 %v3571_v7, %v1073_v11  ;;  %v1072_v9 = vmul.f32 %v3750_v1, %v1024_v36  ;;  %v4190_v58 = vld [vmem:[#allocation17_spill] sm:$0xff] }
 0x27c   : > { %1733 = vmatprep.mubr.bf16.mxu0 %v1219_v48  ;;  %v1227_v33 = vpack.c.bf16 %v1207_v5, %v1203_v52  ;;  %v1130_v14 = vmul.f32 %v3571_v7, %v1077_v19  ;;  %v1076_v25 = vmul.f32 %v3766_v62, %v1028_v32  ;;  %v3853_v26 = vrot.slane %v1296_v37, %v4190_v58 }
 0x27d   : > { %v1202_v0 = vmax.f32 %v1170_v42, 0.0  ;;  %v1206_v44 = vmax.f32 %v1174_v22, 0.0  ;;  %v1179_v60 = vadd.f32 %v3574_v21, %v1126_v50  ;;  %v1125_v59 = vmul.f32 %v3552_v43, %v1072_v9  ;;  %1716 = vmatpush1.bf16.msra.mxu0 %v2748_v2 }
 0x27e   : > { %v1183_v47 = vadd.f32 %v3574_v21, %v1130_v14  ;;  %v1129_v35 = vmul.f32 %v3552_v43, %v1076_v25  ;;  %1717 = vmatprep.subr.bf16.mxu0 %v2753_v13  ;;  %v2754_v21 = vld [vmem:[#allocation7 + $0x190] ss:$8 sps:$4 sm:$0xff]   ;;  %v2757_v43 = vld [vmem:[#allocation7 + $0x1a0] ss:$8 sps:$4 sm:$0xff]   ;;  %v3856_v40 = vrot.slane %v1296_v37, %v4191_v39 }
 0x27f   : > { %v1226_v8 = vpack.c.bf16 %v1206_v44, %v1202_v0  ;;  %v1211_v7 = vmax.f32 %v1179_v60, 0.0  ;;  %v1178_v1 = vadd.f32 %v3563_v51, %v1125_v59 }
 0x280   : > { %v1215_v54 = vmax.f32 %v1183_v47, 0.0  ;;  %v1182_v62 = vadd.f32 %v3563_v51, %v1129_v35  ;;  %v2768_v51 = vld [vmem:[#allocation7 + $0x1d4] ss:$8 sps:$4 sm:$0xff]  }
 0x281   : > { %v1210_v15 = vmax.f32 %v1178_v1, 0.0  ;;  %1718 = vmatpush1.bf16.msra.mxu0 %v2751_v17 }
 0x282   : > { %v1231_v41 = vpack.c.bf16 %v1215_v54, %v1211_v7  ;;  %v1214_v30 = vmax.f32 %v1182_v62, 0.0  ;;  %1719 = vmatprep.subr.bf16.mxu0 %v2756_v10 }
 0x284   : > { %v1230_v56 = vpack.c.bf16 %v1214_v30, %v1210_v15 }
 0x285   : > { %1720 = vmatpush1.bf16.msra.mxu0 %v2754_v21 }
 0x286   : > { %1721 = vmatprep.subr.bf16.mxu0 %v2759_v29 }
 0x289   : > { %1722 = vmatpush1.bf16.msra.mxu0 %v2757_v43 }
 0x28a   : > { %1723 = vmatprep.subr.bf16.mxu0 %v2762_v55 }
 0x28d   : > { %1724 = vmatpush1.bf16.msra.mxu0 %v2760_v46 }
 0x28e   : > { %1725 = vmatprep.subr.bf16.mxu0 %v2765_v57 }
 0x291   : > { %1726 = vmatpush1.bf16.msra.mxu0 %v2763_v16 }
 0x292   : > { %1727 = vmatprep.subr.bf16.mxu0 %v2768_v51 }
 0x295   : > { %1728 = vmatpush1.bf16.msra.mxu0 %v2766_v12 }
 0x296   : > { %1729 = vmatprep.subr.bf16.mxu0 %v2771_v24 }
 0x299   : > { %1730 = vmatpush1.bf16.msra.mxu0 %v2769_v28 }
 0x29a   : > { %1731 = vmatprep.subr.bf16.mxu0 %v2774_v63 }
 0x29d   : > { %1732 = vmatpush1.bf16.msra.mxu0 %v2772_v45 }
 0x2a0   : > { %1734 = vmatmul.mubr.bf16.vlgmr.msra.gmra.mrb[0].mxu0 %v3768_v23 }
 0x2a1   : > { %1743 = vmatprep.mubr.bf16.mxu0 %v3795_v31 }
 0x2a8   : > { %1744 = vmatmul.mubr.bf16.gmra.mrb[4].mxu0 %v3816_v3 }
 0x2a9   : > { %1753 = vmatprep.mubr.bf16.mxu0 %v1227_v33 }
 0x2b0   : > { %1754 = vmatmul.mubr.bf16.gmra.mrb[8].mxu0 %v1226_v8 }
 0x2b1   : > { %1763 = vmatprep.mubr.bf16.mxu0 %v1231_v41 }
 0x2b8   : > { %1764 = vmatmul.mubr.bf16.gmra.mrb[12].mxu0 %v1230_v56 }
 0x373   : > { %v1735_v18 = vpop.f32.mrb[0].mxu0 }
 0x374   : > { %v3859_v23 = vadd.f32 %v1735_v18, %v3853_v26  ;;  %v1737_v31 = vpop.f32.mrb[1].mxu0 }
 0x375   : > { %v3862_v4 = vadd.f32 %v1737_v31, %v3856_v40  ;;  %v1739_v53 = vpop.f32.mrb[2].mxu0 }
 0x376   : > { %v3865_v3 = vadd.f32 %v1739_v53, %v3853_v26  ;;  %v1741_v6 = vpop.f32.mrb[3].mxu0  ;;  %v1800_v48 = vmul.f32 %v3859_v23, %v3859_v23  ;;  %v2775_v53 = vld [vmem:[#allocation8 + $0x40] sm:$0xff]  }
 0x377   : > { %v3868_v61 = vadd.f32 %v1741_v6, %v3856_v40  ;;  %v1776_v20 = vadd.f32 %v3862_v4, %v3859_v23  ;;  %v1801_v38 = vmul.f32 %v3862_v4, %v3862_v4  ;;  %v2776_v6 = vld [vmem:[#allocation8] sm:$0xff]   ;;  %2469 = vmatprep.subr.bf16.mxu1 %v2775_v53 }
 0x378   : > { %v1802_v49 = vmul.f32 %v3865_v3, %v3865_v3  ;;  %2470 = vmatpush3.bf16.msra.mxu1 %v2776_v6  ;;  %v1774_v6 = vld [vmem:[%s4133_s7] sm:$0x3] }
 0x379   : > { %1777 = vadd.xlane.f32.xlu0 %v1776_v20  ;;  %v1779_v27 = vadd.f32 %v3868_v61, %v3865_v3  ;;  %v1803_v52 = vmul.f32 %v3868_v61, %v3868_v61  ;;  %v1816_v34 = vadd.f32 %v1801_v38, %v1800_v48  ;;  %v2777_v20 = vld [vmem:[#allocation8 + $0x48] sm:$0xff]   ;;  %v2779_v38 = vld [vmem:[#allocation8 + $0x50] sm:$0xff]  }
 0x37a   : > { %v2778_v48 = vld [vmem:[#allocation8 + $0x8] sm:$0xff]   ;;  %2471 = vmatprep.subr.bf16.mxu1 %v2777_v20 }
 0x37b   : > { %v1745_v5 = vpop.f32.mrb[4].mxu0  ;;  %1780 = vadd.xlane.f32.xlu1 %v1779_v27  ;;  %v1819_v32 = vadd.f32 %v1803_v52, %v1802_v49  ;;  %v2780_v27 = vld [vmem:[#allocation8 + $0x10] sm:$0xff]   ;;  %v2781_v49 = vld [vmem:[#allocation8 + $0x58] sm:$0xff]  }
 0x37c   : > { %v3883_v11 = vadd.f32 %v1745_v5, %v3853_v26  ;;  %v1747_v42 = vpop.f32.mrb[5].mxu0  ;;  %2472 = vmatpush3.bf16.msra.mxu1 %v2778_v48  ;;  %v2782_v52 = vld [vmem:[#allocation8 + $0x18] sm:$0xff]   ;;  %v2783_v5 = vld [vmem:[#allocation8 + $0x60] sm:$0xff]  }
 0x37d   : > { %v3886_v19 = vadd.f32 %v1747_v42, %v3856_v40  ;;  %v1749_v36 = vpop.f32.mrb[6].mxu0  ;;  %1817 = vadd.xlane.f32.xlu0 %v1816_v34  ;;  %2473 = vmatprep.subr.bf16.mxu1 %v2779_v38  ;;  %v2784_v34 = vld [vmem:[#allocation8 + $0x20] sm:$0xff]   ;;  %v2785_v42 = vld [vmem:[#allocation8 + $0x68] sm:$0xff]  }
 0x37e   : > { %v3889_v2 = vadd.f32 %v1749_v36, %v3853_v26  ;;  %v1751_v33 = vpop.f32.mrb[7].mxu0  ;;  %v1804_v13 = vmul.f32 %v3883_v11, %v3883_v11  ;;  %v2786_v36 = vld [vmem:[#allocation8 + $0x28] sm:$0xff]  }
 0x37f   : > { %v3892_v22 = vadd.f32 %v1751_v33, %v3856_v40  ;;  %1820 = vadd.xlane.f32.xlu1 %v1819_v32  ;;  %v1782_v50 = vadd.f32 %v3886_v19, %v3883_v11  ;;  %v1805_v14 = vmul.f32 %v3886_v19, %v3886_v19  ;;  %v2787_v32 = vld [vmem:[#allocation8 + $0x70] sm:$0xff]  }
 0x380   : > { %v1806_v25 = vmul.f32 %v3889_v2, %v3889_v2  ;;  %2474 = vmatpush3.bf16.msra.mxu1 %v2780_v27  ;;  %v2788_v33 = vld [vmem:[#allocation8 + $0x30] sm:$0xff]   ;;  %v1775_v27 = vld [vmem:[%s4134_s8] sm:$0x3] }
 0x381   : > { %1783 = vadd.xlane.f32.xlu0 %v1782_v50  ;;  %v1785_v9 = vadd.f32 %v3892_v22, %v3889_v2  ;;  %v1807_v0 = vmul.f32 %v3892_v22, %v3892_v22  ;;  %v1822_v60 = vadd.f32 %v1805_v14, %v1804_v13  ;;  %2475 = vmatprep.subr.bf16.mxu1 %v2781_v49  ;;  %v2789_v50 = vld [vmem:[#allocation8 + $0x78] sm:$0xff]  }
 0x382   : > { %v2790_v13 = vld [vmem:[#allocation8 + $0x38] sm:$0xff]  }
 0x383   : > { %v1755_v44 = vpop.f32.mrb[8].mxu0  ;;  %1786 = vadd.xlane.f32.xlu1 %v1785_v9  ;;  %v1825_v8 = vadd.f32 %v1807_v0, %v1806_v25 }
 0x384   : > { %v3907_v47 = vadd.f32 %v1755_v44, %v3853_v26  ;;  %v1757_v59 = vpop.f32.mrb[9].mxu0  ;;  %2476 = vmatpush3.bf16.msra.mxu1 %v2782_v52 }
 0x385   : > { %v3910_v35 = vadd.f32 %v1757_v59, %v3856_v40  ;;  %v1759_v17 = vpop.f32.mrb[10].mxu0  ;;  %1823 = vadd.xlane.f32.xlu0 %v1822_v60  ;;  %2477 = vmatprep.subr.bf16.mxu1 %v2783_v5  ;;  %v3977_v5 = vrot.slane %v1774_v6, %v4190_v58 }
 0x386   : > { %v3913_v10 = vadd.f32 %v1759_v17, %v3853_v26  ;;  %v1761_v7 = vpop.f32.mrb[11].mxu0  ;;  %v1808_v62 = vmul.f32 %v3907_v47, %v3907_v47 }
 0x387   : > { %v3916_v54 = vadd.f32 %v1761_v7, %v3856_v40  ;;  %1826 = vadd.xlane.f32.xlu1 %v1825_v8  ;;  %v1788_v1 = vadd.f32 %v3910_v35, %v3907_v47  ;;  %v1809_v41 = vmul.f32 %v3910_v35, %v3910_v35 }
 0x388   : > { %v1810_v30 = vmul.f32 %v3913_v10, %v3913_v10  ;;  %2478 = vmatpush3.bf16.msra.mxu1 %v2784_v34 }
 0x389   : > { %1789 = vadd.xlane.f32.xlu0 %v1788_v1  ;;  %v1791_v15 = vadd.f32 %v3916_v54, %v3913_v10  ;;  %v1811_v21 = vmul.f32 %v3916_v54, %v3916_v54  ;;  %v1828_v56 = vadd.f32 %v1809_v41, %v1808_v62  ;;  %2479 = vmatprep.subr.bf16.mxu1 %v2785_v42 }
 0x38b   : > { %v1765_v29 = vpop.f32.mrb[12].mxu0  ;;  %1792 = vadd.xlane.f32.xlu1 %v1791_v15  ;;  %v1831_v16 = vadd.f32 %v1811_v21, %v1810_v30 }
 0x38c   : > { %v3931_v43 = vadd.f32 %v1765_v29, %v3853_v26  ;;  %v1767_v55 = vpop.f32.mrb[13].mxu0  ;;  %2480 = vmatpush3.bf16.msra.mxu1 %v2786_v36 }
 0x38d   : > { %v3934_v46 = vadd.f32 %v1767_v55, %v3856_v40  ;;  %v1769_v57 = vpop.f32.mrb[14].mxu0  ;;  %1829 = vadd.xlane.f32.xlu0 %v1828_v56  ;;  %2481 = vmatprep.subr.bf16.mxu1 %v2787_v32 }
 0x38e   : > { %v3937_v51 = vadd.f32 %v1769_v57, %v3853_v26  ;;  %v1771_v12 = vpop.f32.mrb[15].mxu0  ;;  %v1812_v63 = vmul.f32 %v3931_v43, %v3931_v43 }
 0x38f   : > { %v3940_v24 = vadd.f32 %v1771_v12, %v3856_v40  ;;  %1832 = vadd.xlane.f32.xlu1 %v1831_v16  ;;  %v1794_v28 = vadd.f32 %v3934_v46, %v3931_v43  ;;  %v1813_v45 = vmul.f32 %v3934_v46, %v3934_v46 }
 0x390   : > { %v1814_v26 = vmul.f32 %v3937_v51, %v3937_v51  ;;  %2482 = vmatpush3.bf16.msra.mxu1 %v2788_v33 }
 0x391   : > { %1795 = vadd.xlane.f32.xlu0 %v1794_v28  ;;  %v1797_v37 = vadd.f32 %v3940_v24, %v3937_v51  ;;  %v1815_v40 = vmul.f32 %v3940_v24, %v3940_v24  ;;  %v1834_v18 = vadd.f32 %v1813_v45, %v1812_v63  ;;  %2483 = vmatprep.subr.bf16.mxu1 %v2789_v50 }
 0x393   : > { %1798 = vadd.xlane.f32.xlu1 %v1797_v37  ;;  %v1837_v31 = vadd.f32 %v1815_v40, %v1814_v26 }
 0x394   : > { %2484 = vmatpush3.bf16.msra.mxu1 %v2790_v13  ;;  %v3984_v13 = vrot.slane %v1774_v6, %v4191_v39 }
 0x395   : > { %1835 = vadd.xlane.f32.xlu0 %v1834_v18 }
 0x397   : > { %1838 = vadd.xlane.f32.xlu1 %v1837_v31 }
 0x406   : > { %v1778_v14 = vpop.xlane.xlu0 %1777 }
 0x407   : > { %v1840_v9 = vmul.f32 0.00390625, %v1778_v14  ;;  %v3987_v14 = vrot.slane %v1775_v27, %v4191_v39 }
 0x408   : > { %v1781_v25 = vpop.xlane.xlu1 %1780 }
 0x409   : > { %v3954_v0 = vmul.f32 0.00390625, %v1781_v25  ;;  %v1856_v60 = vmul.f32 %v1840_v9, %v1840_v9  ;;  %v1880_v32 = vsub.f32 %v3859_v23, %v1840_v9  ;;  %v1881_v33 = vsub.f32 %v3862_v4, %v1840_v9 }
 0x40a   : > { %v1818_v44 = vpop.xlane.xlu0 %1817 }
 0x40b   : > { %v1848_v59 = vmul.f32 0.00390625, %v1818_v44  ;;  %v1857_v7 = vmul.f32 %v3954_v0, %v3954_v0  ;;  %v1883_v23 = vsub.f32 %v3868_v61, %v3954_v0 }
 0x40c   : > { %v1821_v17 = vpop.xlane.xlu1 %1820 }
 0x40d   : > { %v1864_v8 = vsub.f32 %v1848_v59, %v1856_v60  ;;  %v1849_v1 = vmul.f32 0.00390625, %v1821_v17  ;;  %v1882_v17 = vsub.f32 %v3865_v3, %v3954_v0 }
 0x40e   : > { %v1784_v62 = vpop.xlane.xlu0 %1783 }
 0x40f   : > { %v1872_v41 = vmax.f32 %v1864_v8, 0.0  ;;  %v1865_v15 = vsub.f32 %v1849_v1, %v1857_v7  ;;  %v3958_v30 = vmul.f32 0.00390625, %v1784_v62 }
 0x410   : > { %v1787_v21 = vpop.xlane.xlu1 %1786 }
 0x411   : > { %v1896_v29 = vadd.f32 1e-05, %v1872_v41  ;;  %v1873_v56 = vmax.f32 %v1865_v15, 0.0  ;;  %v3960_v55 = vmul.f32 0.00390625, %v1787_v21  ;;  %v1858_v12 = vmul.f32 %v3958_v30, %v3958_v30 }
 0x412   : > { %v1824_v57 = vpop.xlane.xlu0 %1823  ;;  %v1884_v3 = vsub.f32 %v3883_v11, %v3958_v30  ;;  %v1885_v11 = vsub.f32 %v3886_v19, %v3958_v30 }
 0x413   : > { %2807 = vrsqrt.f32 %v1896_v29  ;;  %v1897_v16 = vadd.f32 1e-05, %v1873_v56  ;;  %v1850_v28 = vmul.f32 0.00390625, %v1824_v57  ;;  %v1859_v37 = vmul.f32 %v3960_v55, %v3960_v55 }
 0x414   : > { %v1827_v63 = vpop.xlane.xlu1 %1826  ;;  %v3999_v56 = vrot.slane %v1775_v27, %v4190_v58 }
 0x415   : > { %2809 = vrsqrt.f32 %v1897_v16  ;;  %v1866_v45 = vsub.f32 %v1850_v28, %v1858_v12  ;;  %v1851_v26 = vmul.f32 0.00390625, %v1827_v63 }
 0x416   : > { %v1790_v40 = vpop.xlane.xlu0 %1789 }
 0x417   : > { %v1874_v18 = vmax.f32 %v1866_v45, 0.0  ;;  %v1867_v31 = vsub.f32 %v1851_v26, %v1859_v37  ;;  %v3966_v53 = vmul.f32 0.00390625, %v1790_v40  ;;  %v1887_v40 = vsub.f32 %v3892_v22, %v3960_v55 }
 0x418   : > { %v1793_v20 = vpop.xlane.xlu1 %1792  ;;  %v1886_v22 = vsub.f32 %v3889_v2, %v3960_v55 }
 0x419   : > { %v1898_v48 = vadd.f32 1e-05, %v1874_v18  ;;  %v1875_v38 = vmax.f32 %v1867_v31, 0.0  ;;  %v3974_v49 = vmul.f32 0.00390625, %v1793_v20  ;;  %v1860_v42 = vmul.f32 %v3966_v53, %v3966_v53 }
 0x41a   : > { %v1830_v52 = vpop.xlane.xlu0 %1829 }
 0x41b   : > { %2811 = vrsqrt.f32 %v1898_v48  ;;  %v1899_v34 = vadd.f32 1e-05, %v1875_v38  ;;  %v1852_v36 = vmul.f32 0.00390625, %v1830_v52  ;;  %v1861_v60 = vmul.f32 %v3974_v49, %v3974_v49 }
 0x41c   : > { %v1833_v50 = vpop.xlane.xlu1 %1832 }
 0x41d   : > { %v2808_v25 = vpop.eup %2807  ;;  %2813 = vrsqrt.f32 %v1899_v34  ;;  %v1868_v44 = vsub.f32 %v1852_v36, %v1860_v42  ;;  %v1853_v59 = vmul.f32 0.00390625, %v1833_v50 }
 0x41e   : > { %v1912_v4 = vmul.f32 %v2808_v25, %v1880_v32  ;;  %v1796_v9 = vpop.xlane.xlu0 %1795  ;;  %v1913_v8 = vmul.f32 %v2808_v25, %v1881_v33 }
 0x41f   : > { %v2810_v7 = vpop.eup %2809  ;;  %v1876_v1 = vmax.f32 %v1868_v44, 0.0  ;;  %v1869_v39 = vsub.f32 %v1853_v59, %v1861_v60  ;;  %v3995_v62 = vmul.f32 0.00390625, %v1796_v9 }
 0x420   : > { %v1914_v41 = vmul.f32 %v2810_v7, %v1882_v17  ;;  %v1799_v15 = vpop.xlane.xlu1 %1798  ;;  %v1915_v21 = vmul.f32 %v2810_v7, %v1883_v23  ;;  %v1940_v29 = vmul.f32 %v3984_v13, %v1913_v8  ;;  %v1939_v57 = vmul.f32 %v3977_v5, %v1912_v4 }
 0x421   : > { %v1900_v61 = vadd.f32 1e-05, %v1876_v1  ;;  %v1877_v0 = vmax.f32 %v1869_v39, 0.0  ;;  %v4004_v16 = vmul.f32 0.00390625, %v1799_v15  ;;  %v1862_v12 = vmul.f32 %v3995_v62, %v3995_v62 }
 0x422   : > { %v1836_v28 = vpop.xlane.xlu0 %1835  ;;  %v1942_v63 = vmul.f32 %v3984_v13, %v1915_v21  ;;  %v1967_v45 = vadd.f32 %v3987_v14, %v1940_v29  ;;  %v1941_v26 = vmul.f32 %v3977_v5, %v1914_v41  ;;  %v1966_v34 = vadd.f32 %v3999_v56, %v1939_v57 }
 0x423   : > { %2815 = vrsqrt.f32 %v1900_v61  ;;  %v1901_v58 = vadd.f32 1e-05, %v1877_v0  ;;  %v1854_v37 = vmul.f32 0.00390625, %v1836_v28  ;;  %v1863_v18 = vmul.f32 %v4004_v16, %v4004_v16 }
 0x424   : > { %v1839_v31 = vpop.xlane.xlu1 %1838  ;;  %v1969_v6 = vadd.f32 %v3987_v14, %v1942_v63  ;;  %v1983_v27 = vmax.f32 %v1967_v45, 0.0  ;;  %v1968_v42 = vadd.f32 %v3999_v56, %v1941_v26  ;;  %v1982_v25 = vmax.f32 %v1966_v34, 0.0 }
 0x425   : > { %v2812_v20 = vpop.eup %2811  ;;  %2817 = vrsqrt.f32 %v1901_v58  ;;  %v1870_v48 = vsub.f32 %v1854_v37, %v1862_v12  ;;  %v1855_v38 = vmul.f32 0.00390625, %v1839_v31  ;;  %v1888_v39 = vsub.f32 %v3907_v47, %v3966_v53 }
 0x426   : > { %v1985_v52 = vmax.f32 %v1969_v6, 0.0  ;;  %v1917_v19 = vmul.f32 %v2812_v20, %v1885_v11  ;;  %v1916_v33 = vmul.f32 %v2812_v20, %v1884_v3  ;;  %v1984_v44 = vmax.f32 %v1968_v42, 0.0 }
 0x427   : > { %v2814_v30 = vpop.eup %2813  ;;  %v1878_v36 = vmax.f32 %v1870_v48, 0.0  ;;  %v1871_v32 = vsub.f32 %v1855_v38, %v1863_v18  ;;  %v1889_v41 = vsub.f32 %v3910_v35, %v3966_v53  ;;  %v1890_v3 = vsub.f32 %v3913_v10, %v3974_v49 }
 0x428   : > { %v1999_v50 = vpack.c.bf16 %v1985_v52, %v1983_v27  ;;  %v1919_v60 = vmul.f32 %v2814_v30, %v1887_v40  ;;  %v1944_v23 = vmul.f32 %v3984_v13, %v1917_v19  ;;  %v1918_v4 = vmul.f32 %v2814_v30, %v1886_v22 }
 0x429   : > { %v1902_v59 = vadd.f32 1e-05, %v1878_v36  ;;  %v1879_v17 = vmax.f32 %v1871_v32, 0.0  ;;  %v1998_v9 = vpack.c.bf16 %v1984_v44, %v1982_v25  ;;  %v1943_v7 = vmul.f32 %v3977_v5, %v1916_v33 }
 0x42a   : > { %2173 = vmatprep.mubr.bf16.mxu1 %v1999_v50  ;;  %v1946_v8 = vmul.f32 %v3984_v13, %v1919_v60  ;;  %v1971_v55 = vadd.f32 %v3987_v14, %v1944_v23  ;;  %v1945_v1 = vmul.f32 %v3977_v5, %v1918_v4  ;;  %v1891_v61 = vsub.f32 %v3916_v54, %v3974_v49 }
 0x42b   : > { %2819 = vrsqrt.f32 %v1902_v59  ;;  %v1903_v2 = vadd.f32 1e-05, %v1879_v17  ;;  %2174 = vmatmul.mubr.bf16.vlgmr.msra.gmra.mrb[32].mxu1 %v1998_v9  ;;  %v1970_v21 = vadd.f32 %v3999_v56, %v1943_v7  ;;  %v1892_v31 = vsub.f32 %v3931_v43, %v3995_v62 }
 0x42c   : > { %v1973_v15 = vadd.f32 %v3987_v14, %v1946_v8  ;;  %v1972_v0 = vadd.f32 %v3999_v56, %v1945_v1  ;;  %v1987_v57 = vmax.f32 %v1971_v55, 0.0  ;;  %v1893_v6 = vsub.f32 %v3934_v46, %v3995_v62 }
 0x42d   : > { %v2816_v29 = vpop.eup %2815  ;;  %2821 = vrsqrt.f32 %v1903_v2  ;;  %v1986_v53 = vmax.f32 %v1970_v21, 0.0  ;;  %v1895_v27 = vsub.f32 %v3940_v24, %v4004_v16  ;;  %v1894_v43 = vsub.f32 %v3937_v51, %v4004_v16 }
 0x42e   : > { %v1989_v47 = vmax.f32 %v1973_v15, 0.0  ;;  %v1921_v12 = vmul.f32 %v2816_v29, %v1889_v41  ;;  %v1920_v28 = vmul.f32 %v2816_v29, %v1888_v39  ;;  %v1988_v63 = vmax.f32 %v1972_v0, 0.0 }
 0x42f   : > { %v2818_v35 = vpop.eup %2817 }
 0x430   : > { %v2001_v45 = vpack.c.bf16 %v1989_v47, %v1987_v57  ;;  %v1923_v58 = vmul.f32 %v2818_v35, %v1891_v61  ;;  %v1948_v37 = vmul.f32 %v3984_v13, %v1921_v12  ;;  %v1922_v26 = vmul.f32 %v2818_v35, %v1890_v3 }
 0x431   : > { %v2000_v11 = vpack.c.bf16 %v1988_v63, %v1986_v53  ;;  %v1947_v10 = vmul.f32 %v3977_v5, %v1920_v28 }
 0x432   : > { %2181 = vmatprep.mubr.bf16.mxu1 %v2001_v45  ;;  %v1950_v54 = vmul.f32 %v3984_v13, %v1923_v58  ;;  %v1975_v49 = vadd.f32 %v3987_v14, %v1948_v37  ;;  %v1949_v40 = vmul.f32 %v3977_v5, %v1922_v26 }
 0x433   : > { %v1974_v18 = vadd.f32 %v3999_v56, %v1947_v10  ;;  %2182 = vmatmul.mubr.bf16.gmra.mrb[36].mxu1 %v2000_v11 }
 0x434   : > { %v1977_v20 = vadd.f32 %v3987_v14, %v1950_v54  ;;  %v1976_v48 = vadd.f32 %v3999_v56, %v1949_v40  ;;  %v1991_v52 = vmax.f32 %v1975_v49, 0.0 }
 0x435   : > { %v2820_v38 = vpop.eup %2819  ;;  %v1990_v34 = vmax.f32 %v1974_v18, 0.0 }
 0x436   : > { %v1993_v42 = vmax.f32 %v1977_v20, 0.0  ;;  %v1992_v19 = vmax.f32 %v1976_v48, 0.0  ;;  %v1925_v30 = vmul.f32 %v2820_v38, %v1893_v6  ;;  %v1924_v22 = vmul.f32 %v2820_v38, %v1892_v31 }
 0x437   : > { %v2822_v36 = vpop.eup %2821 }
 0x438   : > { %v2003_v46 = vpack.c.bf16 %v1993_v42, %v1991_v52  ;;  %v2002_v62 = vpack.c.bf16 %v1992_v19, %v1990_v34  ;;  %v1927_v32 = vmul.f32 %v2822_v36, %v1895_v27  ;;  %v1952_v33 = vmul.f32 %v3984_v13, %v1925_v30 }
 0x439   : > { %v1926_v50 = vmul.f32 %v2822_v36, %v1894_v43  ;;  %v1951_v25 = vmul.f32 %v3977_v5, %v1924_v22 }
 0x43a   : > { %2189 = vmatprep.mubr.bf16.mxu1 %v2003_v46  ;;  %v1954_v24 = vmul.f32 %v3984_v13, %v1927_v32  ;;  %v1979_v44 = vadd.f32 %v3987_v14, %v1952_v33 }
 0x43b   : > { %v1953_v60 = vmul.f32 %v3977_v5, %v1926_v50  ;;  %v1978_v59 = vadd.f32 %v3999_v56, %v1951_v25  ;;  %2190 = vmatmul.mubr.bf16.gmra.mrb[40].mxu1 %v2002_v62  ;;  %v2445_v5 = vld [vmem:[%s4192_s25] ss:$0 sm:$0xff] }
 0x43c   : > { %v1981_v51 = vadd.f32 %v3987_v14, %v1954_v24  ;;  %v1995_v17 = vmax.f32 %v1979_v44, 0.0 }
 0x43d   : > { %v1980_v16 = vadd.f32 %v3999_v56, %v1953_v60  ;;  %v1994_v4 = vmax.f32 %v1978_v59, 0.0 }
 0x43e   : > { %v1997_v23 = vmax.f32 %v1981_v51, 0.0 }
 0x43f   : > { %v1996_v9 = vmax.f32 %v1980_v16, 0.0 }
 0x440   : > { %v2005_v8 = vpack.c.bf16 %v1997_v23, %v1995_v17 }
 0x441   : > { %v2004_v7 = vpack.c.bf16 %v1996_v9, %v1994_v4 }
 0x442   : > { %2197 = vmatprep.mubr.bf16.mxu1 %v2005_v8 }
 0x443   : > { %2198 = vmatmul.mubr.bf16.gmra.mrb[44].mxu1 %v2004_v7 }
 0x4fe   : > { %v2485_v13 = vpop.f32.mrb[32].mxu1 }
 0x4ff   : > { %v2486_v2 = vpop.f32.mrb[33].mxu1 }
 0x500   : > { %v2487_v55 = vadd.f32 %v2486_v2, %v2485_v13  ;;  %v2488_v1 = vpop.f32.mrb[34].mxu1 }
 0x501   : > { %v2489_v14 = vpop.f32.mrb[35].mxu1 }
 0x502   : > { %v2176_v39 = vadd.f32 %v2487_v55, %v2445_v5  ;;  %v2490_v56 = vadd.f32 %v2489_v14, %v2488_v1 }
 0x504   : > { %2206 = vst [vmem:[%s4066_s11] sm:$0xff] %v2176_v39  ;;  %v2179_v41 = vadd.f32 %v2490_v56, %v2445_v5 }
 0x506   : > { %2207 = vst [vmem:[%s4066_s11 + $0x8] sm:$0xff] %v2179_v41  ;;  %v2491_v15 = vpop.f32.mrb[36].mxu1 }
 0x507   : > { %v2492_v21 = vpop.f32.mrb[37].mxu1 }
 0x508   : > { %v2493_v29 = vadd.f32 %v2492_v21, %v2491_v15  ;;  %v2494_v3 = vpop.f32.mrb[38].mxu1 }
 0x509   : > { %v2495_v61 = vpop.f32.mrb[39].mxu1 }
 0x50a   : > { %v2184_v0 = vadd.f32 %v2493_v29, %v2445_v5  ;;  %v2496_v57 = vadd.f32 %v2495_v61, %v2494_v3 }
 0x50c   : > { %2208 = vst [vmem:[%s4066_s11 + $0x10] sm:$0xff] %v2184_v0  ;;  %v2187_v47 = vadd.f32 %v2496_v57, %v2445_v5 }
 0x50e   : > { %2209 = vst [vmem:[%s4066_s11 + $0x18] sm:$0xff] %v2187_v47  ;;  %v2497_v12 = vpop.f32.mrb[40].mxu1 }
 0x50f   : > { %v2498_v28 = vpop.f32.mrb[41].mxu1 }
 0x510   : > { %v2499_v35 = vadd.f32 %v2498_v28, %v2497_v12  ;;  %v2500_v53 = vpop.f32.mrb[42].mxu1 }
 0x511   : > { %v2501_v63 = vpop.f32.mrb[43].mxu1 }
 0x512   : > { %v2192_v45 = vadd.f32 %v2499_v35, %v2445_v5  ;;  %v2502_v58 = vadd.f32 %v2501_v63, %v2500_v53 }
 0x514   : > { %2210 = vst [vmem:[%s4066_s11 + $0x20] sm:$0xff] %v2192_v45  ;;  %v2195_v37 = vadd.f32 %v2502_v58, %v2445_v5 }
 0x516   : > { %2211 = vst [vmem:[%s4066_s11 + $0x28] sm:$0xff] %v2195_v37  ;;  %v2503_v26 = vpop.f32.mrb[44].mxu1 }
 0x517   : > { %v2504_v11 = vpop.f32.mrb[45].mxu1 }
 0x518   : > { %v2505_v10 = vadd.f32 %v2504_v11, %v2503_v26  ;;  %v2506_v54 = vpop.f32.mrb[46].mxu1 }
 0x519   : > { %v2507_v49 = vpop.f32.mrb[47].mxu1 }
 0x51a   : > { %v2200_v40 = vadd.f32 %v2505_v10, %v2445_v5  ;;  %v2508_v18 = vadd.f32 %v2507_v49, %v2506_v54 }
 0x51c   : > { %2212 = vst [vmem:[%s4066_s11 + $0x30] sm:$0xff] %v2200_v40  ;;  %v2203_v31 = vadd.f32 %v2508_v18, %v2445_v5 }
 0x51e   : > { %2213 = vst [vmem:[%s4066_s11 + $0x38] sm:$0xff] %v2203_v31 }
 0x51f   : > { %2950 = shalt.err (!%p2947_p12)
}
 0x520   : > { %s2951_s14 = scalar_lea.hbm %s4081_s26, 1024  ;;  %s2955_s11 = scalar_lea.hbm %s4193_s24, 4096 }
 0x521   : > { %p2952_p0 = scmp.ne.s32.totalorder %s4081_s26, %s2951_s14  ;;  %p2956_p11 = scmp.lt.u32.totalorder %s4081_s26, %s4193_s24 }
 0x522   : > { %p2957_p1 = scmp.lt.u32.totalorder %s2955_s11, %s2951_s14  ;;  %p2959_p4 = scmp.lt.u32.totalorder %s2951_s14, %s4081_s26 }
 0x523   : > { %p2953_p5 = pnand %p2952_p0, %p3224_p8 }
 0x524   : > { %p2958_p2 = por %p2957_p1, %p2956_p11 }
 0x525   : > { %p2954_p10 = pneg %p2953_p5 }
 0x526   : > { %p2960_p6 = por %p2959_p4, %p2958_p2 }
 0x528   : > { %p2961_p13 = pnand %p2960_p6, %p2954_p10 }
 0x52a   : > { %2964 = shalt.err (!%p2961_p13)
}
 0x52b   : > { %s3025_s10 = smov 128   ;;  %s3026_s12 = smov 8  }
 0x52c   : > { %2555 = dma.vmem_to_hbm [thread:$0]  (%p3224_p8), %s4076_s1, 1024, %s4081_s26, %s2215_s15, %s3025_s10, %s3025_s10, %s3026_s12  }
 0x52d PF: > { %s4194_s21 = sld [smem:[#allocation15_spill]]  ;;  %s4195_s29 = sld [smem:[#allocation16_spill]] }
 0x52e   : > { %p2582_p3 = scmp.ge.s32.totalorder %s3011_s20, 2 }
 0x533   : > { %s2243_s30 = sand.u32 1, %s4194_s21   ;;  %p4196_p7 = scmp.ne.s32.totalorder %s4195_s29, 0 }
 0x534   : > { %s2244_s14 = scalar_lea.sflag [#allocation4], %s2243_s30 }
 0x535   : > { %p2572_p9 = pnand %p2582_p3, %p4196_p7 }
 0x537   : > { %2994 = dma.done.wait (!%p2572_p9), %s2244_s14, 1024  }
 0x538   : > { %2996 = vsyncadd (!%p2572_p9), %s2244_s14, 4294966272  ;;  %s4197_s23 = smov %s3210_s17  ;;  %p26_p12 = scmp.ge.s32.totalorder %s3210_s17, 6  }
 0x539   : > { %s4198_s17 = smov %s3003_s18  ;;  %s4199_s18 = smov %s3007_s19 }
 0x53a   : > { %s4200_s19 = smov %s3220_s16  ;;  %s4201_s20 = smov %s4197_s23 }
 0x53b   :  { %28 = sbr.rel (!%p26_p12) target bundleno = 11 (0xb), region = 121 }
 0x542   :  { %2249 = vsyncpa [#allocation3], 1 }
 0x543   :  { %2251 = vsyncpa [#allocation3 + $0x1], 1 }
 0x544   :  { %2252 = vsyncpa [#allocation6], 1 }
 0x545   :  { %2253 = vsyncpa [#allocation9], 1 }
 0x546   :  { %2254 = vsyncpa [#allocation4], 1 }
 0x547   :  { %2256 = vsyncpa [#allocation4 + $0x1], 1 }

</bundles_post_ra>
